<compile_context>
chip_gen: v7x
topology: tpu7x:2x2x1
jax: 0.10.0
libtpu: 0.0.40
codegen_flags: <defaults>
</compile_context>

<pallas_src>
import functools

import jax
import jax.numpy as jnp
import numpy as np
from jax.experimental import pallas as pl
from jax.experimental.pallas import tpu as pltpu


def _bigru_kernel(len_ref, gi_ref, whh_ref, bhh_ref,
                  out_ref, fin_ref, h_scr, *, hidden, tc, t_pad):
    """One grid step = `tc` recurrent timesteps for BOTH directions.

    Layouts (float32):
      len_ref : (B, 1)       sequence lengths
      gi_ref  : (tc, B, 6H)  precomputed x@W_ih + b_ih; [..., :3H] = forward at
                             global step k, [..., 3H:] = backward at real time
                             t_pad-1-k (time-reversed in the wrapper)
      whh_ref : (2H, 6H)     block-diag([W_hh_f, W_hh_b])
      bhh_ref : (1, 6H)      [b_hh_f | b_hh_b]
      out_ref : (tc, B, 2H)  [fwd out | bwd out (time-reversed)]
      fin_ref : (B, 2H)      final hidden states (written on last grid step)
      h_scr   : (B, 2H)      carried hidden state [h_fwd | h_bwd]
    """
    c = pl.program_id(0)
    H = hidden

    @pl.when(c == 0)
    def _():
        h_scr[...] = jnp.zeros_like(h_scr)

    len_vec = len_ref[...]            # (B, 1), resident
    whh = whh_ref[...]                # (2H, 6H), resident
    bhh = bhh_ref[...]                # (1, 6H), resident

    def step(s, carry):
        kf = (c * tc + s).astype(jnp.float32)        # global step index
        h = h_scr[...]                               # (B, 2H)
        gi = gi_ref[s]                               # (B, 6H)

        # One fused MXU matmul for both directions (block-diagonal weight).
        gh = jnp.dot(h, whh, preferred_element_type=jnp.float32) + bhh

        def gru_gates(gi_d, gh_d, h_d):
            r = jax.nn.sigmoid(gi_d[:, :H] + gh_d[:, :H])
            z = jax.nn.sigmoid(gi_d[:, H:2 * H] + gh_d[:, H:2 * H])
            n = jnp.tanh(gi_d[:, 2 * H:] + r * gh_d[:, 2 * H:])
            return n + z * (h_d - n)                 # == (1 - z) * n + z * h

        hf_new = gru_gates(gi[:, :3 * H], gh[:, :3 * H], h[:, :H])
        hb_new = gru_gates(gi[:, 3 * H:], gh[:, 3 * H:], h[:, H:])

        # pack_padded_sequence semantics: freeze h outside the valid range.
        mask_f = kf < len_vec                        # fwd: k < length
        mask_b = kf >= (float(t_pad) - len_vec)      # bwd: real time < length

        hf = jnp.where(mask_f, hf_new, h[:, :H])
        hb = jnp.where(mask_b, hb_new, h[:, H:])
        h_scr[...] = jnp.concatenate([hf, hb], axis=-1)

        out = jnp.concatenate([jnp.where(mask_f, hf, 0.0),
                               jnp.where(mask_b, hb, 0.0)], axis=-1)
        out_ref[s] = out.astype(out_ref.dtype)
        return carry

    jax.lax.fori_loop(0, tc, step, 0, unroll=True)

    @pl.when(c == pl.num_programs(0) - 1)
    def _():
        fin_ref[...] = h_scr[...].astype(fin_ref.dtype)


def encoder_forward(x, mask, lengths, params, *, time_chunk=8):
    """x: (B, T, I) batch-first; mask unused (as in the torch module); lengths: (B,).

    Returns (output, final) matching nn.GRU(bidirectional=True) on packed input:
      output: (B, T, 2H) with zeros at padded positions
      final : (1, B, 2H)  = cat([fwd_final, bwd_final], dim=2)
    """
    del mask  # the PyTorch forward ignores `mask`; packing only uses `lengths`
    B, T, I = x.shape
    H = params["w_ih_f"].shape[1] // 3
    f32 = jnp.float32

    Tc = int(min(time_chunk, T))
    nC = int(pl.cdiv(T, Tc))
    T_pad = nC * Tc

    x32 = x.astype(f32)
    # Hoisted, time-independent input projection: one large matmul per
    # direction, emitted time-major (T, B, 3H).  Biases b_ih folded in here.
    gi_f = jnp.einsum("bti,ig->tbg", x32, params["w_ih_f"]) + params["b_ih_f"]
    gi_b = jnp.einsum("bti,ig->tbg", x32, params["w_ih_b"]) + params["b_ih_b"]
    if T_pad != T:
        pad = ((0, T_pad - T), (0, 0), (0, 0))
        gi_f = jnp.pad(gi_f, pad)
        gi_b = jnp.pad(gi_b, pad)
    # Backward stream is fed time-reversed so both directions share index maps.
    gi_cat = jnp.concatenate([gi_f, jnp.flip(gi_b, axis=0)], axis=-1)  # (T_pad, B, 6H)

    # Block-diagonal recurrent weight -> one MXU matmul per step for both dirs.
    whh_cat = jnp.zeros((2 * H, 6 * H), f32)
    whh_cat = whh_cat.at[:H, :3 * H].set(params["w_hh_f"].astype(f32))
    whh_cat = whh_cat.at[H:, 3 * H:].set(params["w_hh_b"].astype(f32))
    bhh_cat = jnp.concatenate([params["b_hh_f"], params["b_hh_b"]],
                              axis=-1).astype(f32)                      # (1, 6H)

    len_col = lengths.astype(f32).reshape(B, 1)

    grid_spec = pltpu.PrefetchScalarGridSpec(
        num_scalar_prefetch=0,
        grid=(nC,),
        in_specs=[
            pl.BlockSpec((B, 1), lambda c: (0, 0)),                 # lengths
            pl.BlockSpec((Tc, B, 6 * H), lambda c: (c, 0, 0)),      # gi_cat chunk
            pl.BlockSpec((2 * H, 6 * H), lambda c: (0, 0)),         # W_hh (resident)
            pl.BlockSpec((1, 6 * H), lambda c: (0, 0)),             # b_hh (resident)
        ],
        out_specs=[
            pl.BlockSpec((Tc, B, 2 * H), lambda c: (c, 0, 0)),      # outputs chunk
            pl.BlockSpec((B, 2 * H), lambda c: (0, 0)),             # final states
        ],
        scratch_shapes=[pltpu.VMEM((B, 2 * H), f32)],
    )

    out_cat, fin_cat = pl.pallas_call(
        functools.partial(_bigru_kernel, hidden=H, tc=Tc, t_pad=T_pad),
        out_shape=(jax.ShapeDtypeStruct((T_pad, B, 2 * H), f32),
                   jax.ShapeDtypeStruct((B, 2 * H), f32)),
        grid_spec=grid_spec,
        compiler_params=pltpu.CompilerParams(
            dimension_semantics=("arbitrary",)),   # time recurrence is serial
    )(len_col, gi_cat, whh_cat, bhh_cat)

    out_f = out_cat[:T, :, :H]                              # (T, B, H)
    out_b = jnp.flip(out_cat[:, :, H:], axis=0)[:T]         # (T, B, H), time-ordered
    output = jnp.transpose(jnp.concatenate([out_f, out_b], axis=-1), (1, 0, 2))
    final = fin_cat[None]                                   # (1, B, 2H)
    return output, final


def init_params(key, input_size, hidden):
    """Deterministic PyTorch-style init: U(-1/sqrt(H), 1/sqrt(H)).
    Weights stored transposed, (in_features, 3H), gate order r, z, n."""
    k = 1.0 / np.sqrt(hidden)
    keys = jax.random.split(key, 12)
    u = lambda kk, shape: jax.random.uniform(kk, shape, jnp.float32, -k, k)
    return dict(
        w_ih_f=u(keys[0], (input_size, 3 * hidden)),
        w_hh_f=u(keys[1], (hidden, 3 * hidden)),
        b_ih_f=u(keys[2], (1, 3 * hidden)),
        b_hh_f=u(keys[3], (1, 3 * hidden)),
        w_ih_b=u(keys[4], (input_size, 3 * hidden)),
        w_hh_b=u(keys[5], (hidden, 3 * hidden)),
        b_ih_b=u(keys[6], (1, 3 * hidden)),
        b_hh_b=u(keys[7], (1, 3 * hidden)),
    )


def _reference(x, lengths, params):
    """Pure-JAX reference (masked scan) for validation."""
    B, T, I = x.shape
    H = params["w_ih_f"].shape[1] // 3

    def cell(x_t, h, wih, whh, bih, bhh):
        gi = x_t @ wih + bih
        gh = h @ whh + bhh
        r = jax.nn.sigmoid(gi[:, :H] + gh[:, :H])
        z = jax.nn.sigmoid(gi[:, H:2 * H] + gh[:, H:2 * H])
        n = jnp.tanh(gi[:, 2 * H:] + r * gh[:, 2 * H:])
        return (1.0 - z) * n + z * h

    valid = (jnp.arange(T)[None, :] < lengths[:, None]).astype(jnp.float32)

    def scan_dir(ts, wih, whh, bih, bhh):
        def step(h, t):
            m = valid[:, t][:, None]
            h_new = cell(x[:, t], h, wih, whh, bih, bhh)
            h = m * h_new + (1.0 - m) * h
            return h, m * h
        h_final, outs = jax.lax.scan(step, jnp.zeros((B, H), jnp.float32), ts)
        return h_final, outs

    hf, of = scan_dir(jnp.arange(T), params["w_ih_f"], params["w_hh_f"],
                      params["b_ih_f"], params["b_hh_f"])
    hb, ob = scan_dir(jnp.arange(T - 1, -1, -1), params["w_ih_b"],
                      params["w_hh_b"], params["b_ih_b"], params["b_hh_b"])
    ob = ob[::-1]
    output = jnp.concatenate([of, ob], axis=-1).transpose(1, 0, 2)
    final = jnp.concatenate([hf, hb], axis=-1)[None]
    return output, final


if __name__ == "__main__":
    B, T, I, H = 2, 8, 16, 32
    key = jax.random.PRNGKey(0)
    kx, kp = jax.random.split(key)

    x = jax.random.normal(kx, (B, T, I), jnp.float32)
    lengths = jnp.array([8, 5], dtype=jnp.int32)         # sorted desc, max == T
    mask = (jnp.arange(T)[None, :] < lengths[:, None]).astype(jnp.float32)
    params = init_params(kp, I, H)

    # time_chunk=4 -> 2 grid chunks: exercises the cross-chunk carried state.
    output, final = encoder_forward(x, mask, lengths, params, time_chunk=4)
    output, final = jax.block_until_ready((output, final))

    ref_out, ref_fin = _reference(x, lengths, params)
    assert output.shape == (B, T, 2 * H) and final.shape == (1, B, 2 * H)
    np.testing.assert_allclose(np.asarray(output), np.asarray(ref_out),
                               rtol=1e-3, atol=1e-3)
    np.testing.assert_allclose(np.asarray(final), np.asarray(ref_fin),
                               rtol=1e-3, atol=1e-3)
    print("KERNEL_OK")
</pallas_src>

<mosaic_0001>
module attributes {stable_mosaic.version = 11 : i64} {
  func.func @_bigru_kernel(%arg0: i32, %arg1: memref<2x1xf32, #tpu.memory_space<vmem>>, %arg2: memref<4x2x192xf32, #tpu.memory_space<vmem>>, %arg3: memref<64x192xf32, #tpu.memory_space<vmem>>, %arg4: memref<1x192xf32, #tpu.memory_space<vmem>>, %arg5: memref<4x2x64xf32, #tpu.memory_space<vmem>>, %arg6: memref<2x64xf32, #tpu.memory_space<vmem>>, %arg7: memref<2x64xf32, #tpu.memory_space<vmem>>) attributes {dimension_semantics = [#tpu.dimension_semantics<arbitrary>], iteration_bounds = array<i64: 2>, scalar_prefetch = 0 : i64, scratch_operands = 1 : i64, tpu.core_type = #tpu.core_type<tc>, window_params = [{pipeline_mode = #tpu.pipeline_mode<synchronous>, transform_indices = @transform_0, window_bounds = array<i64: 2, 1>}, {transform_indices = @transform_1, window_bounds = array<i64: 4, 2, 192>}, {pipeline_mode = #tpu.pipeline_mode<synchronous>, transform_indices = @transform_2, window_bounds = array<i64: 64, 192>}, {pipeline_mode = #tpu.pipeline_mode<synchronous>, transform_indices = @transform_3, window_bounds = array<i64: 1, 192>}, {transform_indices = @transform_4, window_bounds = array<i64: 4, 2, 64>}, {pipeline_mode = #tpu.pipeline_mode<synchronous>, transform_indices = @transform_5, window_bounds = array<i64: 2, 64>}]} {
    %c0_i32 = arith.constant 0 : i32
    %0 = arith.cmpi eq, %arg0, %c0_i32 : i32
    %1 = arith.extui %0 : i1 to i32
    %c0_i32_0 = arith.constant 0 : i32
    %2 = arith.cmpi ne, %1, %c0_i32_0 : i32
    scf.if %2 {
      %cst_76 = arith.constant 0.000000e+00 : f32
      %381 = vector.broadcast %cst_76 : f32 to vector<2x64xf32>
      %c0_77 = arith.constant 0 : index
      %c0_78 = arith.constant 0 : index
      %382 = vector.load %arg7[%c0_77, %c0_78] : memref<2x64xf32, #tpu.memory_space<vmem>>, vector<2x64xf32>
      tpu.vector_store %arg7[%c0_77, %c0_78], %381 {strides = array<i32>} : memref<2x64xf32, #tpu.memory_space<vmem>>, vector<2x64xf32>,
    } else {
    }
    %c0 = arith.constant 0 : index
    %c0_1 = arith.constant 0 : index
    %3 = vector.load %arg1[%c0, %c0_1] : memref<2x1xf32, #tpu.memory_space<vmem>>, vector<2x1xf32>
    %c0_2 = arith.constant 0 : index
    %c0_3 = arith.constant 0 : index
    %4 = vector.load %arg3[%c0_2, %c0_3] : memref<64x192xf32, #tpu.memory_space<vmem>>, vector<64x192xf32>
    %c0_4 = arith.constant 0 : index
    %c0_5 = arith.constant 0 : index
    %5 = vector.load %arg4[%c0_4, %c0_5] : memref<1x192xf32, #tpu.memory_space<vmem>>, vector<1x192xf32>
    %c0_i32_6 = arith.constant 0 : i32
    %c4_i32 = arith.constant 4 : i32
    %6 = arith.muli %arg0, %c4_i32 : i32
    %7 = arith.addi %6, %c0_i32_6 : i32
    %8 = arith.sitofp %7 : i32 to f32
    %c0_7 = arith.constant 0 : index
    %c0_8 = arith.constant 0 : index
    %9 = vector.load %arg7[%c0_7, %c0_8] : memref<2x64xf32, #tpu.memory_space<vmem>>, vector<2x64xf32>
    %10 = arith.index_cast %c0_i32_6 : i32 to index
    %c0_9 = arith.constant 0 : index
    %c0_10 = arith.constant 0 : index
    %11 = vector.load %arg2[%10, %c0_9, %c0_10] : memref<4x2x192xf32, #tpu.memory_space<vmem>>, vector<1x2x192xf32>
    %12 = vector.shape_cast %11 : vector<1x2x192xf32> to vector<2x192xf32>
    %cst = arith.constant dense<0.000000e+00> : vector<2x192xf32>
    %13 = tpu.matmul %9, %4, %cst {dimension_numbers = #tpu.dot_dimension_numbers<[1], [0], [0], [1], [0, 0, 1, 1], [], []>} : vector<2x64xf32>, vector<64x192xf32>, vector<2x192xf32> -> vector<2x192xf32>
    %14 = vector.broadcast %5 : vector<1x192xf32> to vector<2x192xf32>
    %15 = arith.addf %13, %14 : vector<2x192xf32>
    %16 = vector.extract_strided_slice %12 {offsets = [0, 0], sizes = [2, 96], strides = [1, 1]} : vector<2x192xf32> to vector<2x96xf32>
    %17 = vector.extract_strided_slice %15 {offsets = [0, 0], sizes = [2, 96], strides = [1, 1]} : vector<2x192xf32> to vector<2x96xf32>
    %18 = vector.extract_strided_slice %9 {offsets = [0, 0], sizes = [2, 32], strides = [1, 1]} : vector<2x64xf32> to vector<2x32xf32>
    %19 = vector.extract_strided_slice %16 {offsets = [0, 0], sizes = [2, 32], strides = [1, 1]} : vector<2x96xf32> to vector<2x32xf32>
    %20 = vector.extract_strided_slice %17 {offsets = [0, 0], sizes = [2, 32], strides = [1, 1]} : vector<2x96xf32> to vector<2x32xf32>
    %21 = arith.addf %19, %20 : vector<2x32xf32>
    %22 = arith.negf %21 : vector<2x32xf32>
    %23 = math.exp %22 : vector<2x32xf32>
    %cst_11 = arith.constant 1.000000e+00 : f32
    %24 = vector.broadcast %cst_11 : f32 to vector<2x32xf32>
    %25 = arith.addf %24, %23 : vector<2x32xf32>
    %26 = arith.divf %24, %25 : vector<2x32xf32>
    %27 = vector.extract_strided_slice %16 {offsets = [0, 32], sizes = [2, 32], strides = [1, 1]} : vector<2x96xf32> to vector<2x32xf32>
    %28 = vector.extract_strided_slice %17 {offsets = [0, 32], sizes = [2, 32], strides = [1, 1]} : vector<2x96xf32> to vector<2x32xf32>
    %29 = arith.addf %27, %28 : vector<2x32xf32>
    %30 = arith.negf %29 : vector<2x32xf32>
    %31 = math.exp %30 : vector<2x32xf32>
    %cst_12 = arith.constant 1.000000e+00 : f32
    %32 = vector.broadcast %cst_12 : f32 to vector<2x32xf32>
    %33 = arith.addf %32, %31 : vector<2x32xf32>
    %34 = arith.divf %32, %33 : vector<2x32xf32>
    %35 = vector.extract_strided_slice %16 {offsets = [0, 64], sizes = [2, 32], strides = [1, 1]} : vector<2x96xf32> to vector<2x32xf32>
    %36 = vector.extract_strided_slice %17 {offsets = [0, 64], sizes = [2, 32], strides = [1, 1]} : vector<2x96xf32> to vector<2x32xf32>
    %37 = arith.mulf %26, %36 : vector<2x32xf32>
    %38 = arith.addf %35, %37 : vector<2x32xf32>
    %39 = math.tanh %38 : vector<2x32xf32>
    %40 = arith.subf %18, %39 : vector<2x32xf32>
    %41 = arith.mulf %34, %40 : vector<2x32xf32>
    %42 = arith.addf %39, %41 : vector<2x32xf32>
    %43 = vector.extract_strided_slice %12 {offsets = [0, 96], sizes = [2, 96], strides = [1, 1]} : vector<2x192xf32> to vector<2x96xf32>
    %44 = vector.extract_strided_slice %15 {offsets = [0, 96], sizes = [2, 96], strides = [1, 1]} : vector<2x192xf32> to vector<2x96xf32>
    %45 = vector.extract_strided_slice %9 {offsets = [0, 32], sizes = [2, 32], strides = [1, 1]} : vector<2x64xf32> to vector<2x32xf32>
    %46 = vector.extract_strided_slice %43 {offsets = [0, 0], sizes = [2, 32], strides = [1, 1]} : vector<2x96xf32> to vector<2x32xf32>
    %47 = vector.extract_strided_slice %44 {offsets = [0, 0], sizes = [2, 32], strides = [1, 1]} : vector<2x96xf32> to vector<2x32xf32>
    %48 = arith.addf %46, %47 : vector<2x32xf32>
    %49 = arith.negf %48 : vector<2x32xf32>
    %50 = math.exp %49 : vector<2x32xf32>
    %cst_13 = arith.constant 1.000000e+00 : f32
    %51 = vector.broadcast %cst_13 : f32 to vector<2x32xf32>
    %52 = arith.addf %51, %50 : vector<2x32xf32>
    %53 = arith.divf %51, %52 : vector<2x32xf32>
    %54 = vector.extract_strided_slice %43 {offsets = [0, 32], sizes = [2, 32], strides = [1, 1]} : vector<2x96xf32> to vector<2x32xf32>
    %55 = vector.extract_strided_slice %44 {offsets = [0, 32], sizes = [2, 32], strides = [1, 1]} : vector<2x96xf32> to vector<2x32xf32>
    %56 = arith.addf %54, %55 : vector<2x32xf32>
    %57 = arith.negf %56 : vector<2x32xf32>
    %58 = math.exp %57 : vector<2x32xf32>
    %cst_14 = arith.constant 1.000000e+00 : f32
    %59 = vector.broadcast %cst_14 : f32 to vector<2x32xf32>
    %60 = arith.addf %59, %58 : vector<2x32xf32>
    %61 = arith.divf %59, %60 : vector<2x32xf32>
    %62 = vector.extract_strided_slice %43 {offsets = [0, 64], sizes = [2, 32], strides = [1, 1]} : vector<2x96xf32> to vector<2x32xf32>
    %63 = vector.extract_strided_slice %44 {offsets = [0, 64], sizes = [2, 32], strides = [1, 1]} : vector<2x96xf32> to vector<2x32xf32>
    %64 = arith.mulf %53, %63 : vector<2x32xf32>
    %65 = arith.addf %62, %64 : vector<2x32xf32>
    %66 = math.tanh %65 : vector<2x32xf32>
    %67 = arith.subf %45, %66 : vector<2x32xf32>
    %68 = arith.mulf %61, %67 : vector<2x32xf32>
    %69 = arith.addf %66, %68 : vector<2x32xf32>
    %70 = vector.broadcast %8 : f32 to vector<2x1xf32>
    %71 = arith.cmpf olt, %70, %3 : vector<2x1xf32>
    %cst_15 = arith.constant 8.000000e+00 : f32
    %72 = vector.broadcast %cst_15 : f32 to vector<2x1xf32>
    %73 = arith.subf %72, %3 : vector<2x1xf32>
    %74 = vector.broadcast %8 : f32 to vector<2x1xf32>
    %75 = arith.cmpf oge, %74, %73 : vector<2x1xf32>
    %76 = vector.extract_strided_slice %9 {offsets = [0, 0], sizes = [2, 32], strides = [1, 1]} : vector<2x64xf32> to vector<2x32xf32>
    %77 = vector.shape_cast %71 : vector<2x1xi1> to vector<2x1xi1>
    %78 = vector.broadcast %77 : vector<2x1xi1> to vector<2x32xi1>
    %79 = arith.select %78, %42, %76 : vector<2x32xi1>, vector<2x32xf32>
    %80 = vector.extract_strided_slice %9 {offsets = [0, 32], sizes = [2, 32], strides = [1, 1]} : vector<2x64xf32> to vector<2x32xf32>
    %81 = vector.shape_cast %75 : vector<2x1xi1> to vector<2x1xi1>
    %82 = vector.broadcast %81 : vector<2x1xi1> to vector<2x32xi1>
    %83 = arith.select %82, %69, %80 : vector<2x32xi1>, vector<2x32xf32>
    %84 = tpu.concatenate %79, %83 in 1 : vector<2x32xf32>, vector<2x32xf32> -> vector<2x64xf32>
    %c0_16 = arith.constant 0 : index
    %c0_17 = arith.constant 0 : index
    %85 = vector.load %arg7[%c0_16, %c0_17] : memref<2x64xf32, #tpu.memory_space<vmem>>, vector<2x64xf32>
    tpu.vector_store %arg7[%c0_16, %c0_17], %84 {strides = array<i32>} : memref<2x64xf32, #tpu.memory_space<vmem>>, vector<2x64xf32>,
    %cst_18 = arith.constant 0.000000e+00 : f32
    %86 = vector.shape_cast %71 : vector<2x1xi1> to vector<2x1xi1>
    %87 = vector.broadcast %86 : vector<2x1xi1> to vector<2x32xi1>
    %88 = vector.broadcast %cst_18 : f32 to vector<2x32xf32>
    %89 = arith.select %87, %79, %88 : vector<2x32xi1>, vector<2x32xf32>
    %cst_19 = arith.constant 0.000000e+00 : f32
    %90 = vector.shape_cast %75 : vector<2x1xi1> to vector<2x1xi1>
    %91 = vector.broadcast %90 : vector<2x1xi1> to vector<2x32xi1>
    %92 = vector.broadcast %cst_19 : f32 to vector<2x32xf32>
    %93 = arith.select %91, %83, %92 : vector<2x32xi1>, vector<2x32xf32>
    %94 = tpu.concatenate %89, %93 in 1 : vector<2x32xf32>, vector<2x32xf32> -> vector<2x64xf32>
    %95 = arith.index_cast %c0_i32_6 : i32 to index
    %c0_20 = arith.constant 0 : index
    %c0_21 = arith.constant 0 : index
    %96 = vector.load %arg5[%95, %c0_20, %c0_21] : memref<4x2x64xf32, #tpu.memory_space<vmem>>, vector<1x2x64xf32>
    %97 = vector.shape_cast %96 : vector<1x2x64xf32> to vector<2x64xf32>
    %98 = vector.shape_cast %94 : vector<2x64xf32> to vector<1x2x64xf32>
    tpu.vector_store %arg5[%95, %c0_20, %c0_21], %98 {strides = array<i32>} : memref<4x2x64xf32, #tpu.memory_space<vmem>>, vector<1x2x64xf32>,
    %c1_i32 = arith.constant 1 : i32
    %c4_i32_22 = arith.constant 4 : i32
    %99 = arith.muli %arg0, %c4_i32_22 : i32
    %100 = arith.addi %99, %c1_i32 : i32
    %101 = arith.sitofp %100 : i32 to f32
    %c0_23 = arith.constant 0 : index
    %c0_24 = arith.constant 0 : index
    %102 = vector.load %arg7[%c0_23, %c0_24] : memref<2x64xf32, #tpu.memory_space<vmem>>, vector<2x64xf32>
    %103 = arith.index_cast %c1_i32 : i32 to index
    %c0_25 = arith.constant 0 : index
    %c0_26 = arith.constant 0 : index
    %104 = vector.load %arg2[%103, %c0_25, %c0_26] : memref<4x2x192xf32, #tpu.memory_space<vmem>>, vector<1x2x192xf32>
    %105 = vector.shape_cast %104 : vector<1x2x192xf32> to vector<2x192xf32>
    %cst_27 = arith.constant dense<0.000000e+00> : vector<2x192xf32>
    %106 = tpu.matmul %102, %4, %cst_27 {dimension_numbers = #tpu.dot_dimension_numbers<[1], [0], [0], [1], [0, 0, 1, 1], [], []>} : vector<2x64xf32>, vector<64x192xf32>, vector<2x192xf32> -> vector<2x192xf32>
    %107 = vector.broadcast %5 : vector<1x192xf32> to vector<2x192xf32>
    %108 = arith.addf %106, %107 : vector<2x192xf32>
    %109 = vector.extract_strided_slice %105 {offsets = [0, 0], sizes = [2, 96], strides = [1, 1]} : vector<2x192xf32> to vector<2x96xf32>
    %110 = vector.extract_strided_slice %108 {offsets = [0, 0], sizes = [2, 96], strides = [1, 1]} : vector<2x192xf32> to vector<2x96xf32>
    %111 = vector.extract_strided_slice %102 {offsets = [0, 0], sizes = [2, 32], strides = [1, 1]} : vector<2x64xf32> to vector<2x32xf32>
    %112 = vector.extract_strided_slice %109 {offsets = [0, 0], sizes = [2, 32], strides = [1, 1]} : vector<2x96xf32> to vector<2x32xf32>
    %113 = vector.extract_strided_slice %110 {offsets = [0, 0], sizes = [2, 32], strides = [1, 1]} : vector<2x96xf32> to vector<2x32xf32>
    %114 = arith.addf %112, %113 : vector<2x32xf32>
    %115 = arith.negf %114 : vector<2x32xf32>
    %116 = math.exp %115 : vector<2x32xf32>
    %cst_28 = arith.constant 1.000000e+00 : f32
    %117 = vector.broadcast %cst_28 : f32 to vector<2x32xf32>
    %118 = arith.addf %117, %116 : vector<2x32xf32>
    %119 = arith.divf %117, %118 : vector<2x32xf32>
    %120 = vector.extract_strided_slice %109 {offsets = [0, 32], sizes = [2, 32], strides = [1, 1]} : vector<2x96xf32> to vector<2x32xf32>
    %121 = vector.extract_strided_slice %110 {offsets = [0, 32], sizes = [2, 32], strides = [1, 1]} : vector<2x96xf32> to vector<2x32xf32>
    %122 = arith.addf %120, %121 : vector<2x32xf32>
    %123 = arith.negf %122 : vector<2x32xf32>
    %124 = math.exp %123 : vector<2x32xf32>
    %cst_29 = arith.constant 1.000000e+00 : f32
    %125 = vector.broadcast %cst_29 : f32 to vector<2x32xf32>
    %126 = arith.addf %125, %124 : vector<2x32xf32>
    %127 = arith.divf %125, %126 : vector<2x32xf32>
    %128 = vector.extract_strided_slice %109 {offsets = [0, 64], sizes = [2, 32], strides = [1, 1]} : vector<2x96xf32> to vector<2x32xf32>
    %129 = vector.extract_strided_slice %110 {offsets = [0, 64], sizes = [2, 32], strides = [1, 1]} : vector<2x96xf32> to vector<2x32xf32>
    %130 = arith.mulf %119, %129 : vector<2x32xf32>
    %131 = arith.addf %128, %130 : vector<2x32xf32>
    %132 = math.tanh %131 : vector<2x32xf32>
    %133 = arith.subf %111, %132 : vector<2x32xf32>
    %134 = arith.mulf %127, %133 : vector<2x32xf32>
    %135 = arith.addf %132, %134 : vector<2x32xf32>
    %136 = vector.extract_strided_slice %105 {offsets = [0, 96], sizes = [2, 96], strides = [1, 1]} : vector<2x192xf32> to vector<2x96xf32>
    %137 = vector.extract_strided_slice %108 {offsets = [0, 96], sizes = [2, 96], strides = [1, 1]} : vector<2x192xf32> to vector<2x96xf32>
    %138 = vector.extract_strided_slice %102 {offsets = [0, 32], sizes = [2, 32], strides = [1, 1]} : vector<2x64xf32> to vector<2x32xf32>
    %139 = vector.extract_strided_slice %136 {offsets = [0, 0], sizes = [2, 32], strides = [1, 1]} : vector<2x96xf32> to vector<2x32xf32>
    %140 = vector.extract_strided_slice %137 {offsets = [0, 0], sizes = [2, 32], strides = [1, 1]} : vector<2x96xf32> to vector<2x32xf32>
    %141 = arith.addf %139, %140 : vector<2x32xf32>
    %142 = arith.negf %141 : vector<2x32xf32>
    %143 = math.exp %142 : vector<2x32xf32>
    %cst_30 = arith.constant 1.000000e+00 : f32
    %144 = vector.broadcast %cst_30 : f32 to vector<2x32xf32>
    %145 = arith.addf %144, %143 : vector<2x32xf32>
    %146 = arith.divf %144, %145 : vector<2x32xf32>
    %147 = vector.extract_strided_slice %136 {offsets = [0, 32], sizes = [2, 32], strides = [1, 1]} : vector<2x96xf32> to vector<2x32xf32>
    %148 = vector.extract_strided_slice %137 {offsets = [0, 32], sizes = [2, 32], strides = [1, 1]} : vector<2x96xf32> to vector<2x32xf32>
    %149 = arith.addf %147, %148 : vector<2x32xf32>
    %150 = arith.negf %149 : vector<2x32xf32>
    %151 = math.exp %150 : vector<2x32xf32>
    %cst_31 = arith.constant 1.000000e+00 : f32
    %152 = vector.broadcast %cst_31 : f32 to vector<2x32xf32>
    %153 = arith.addf %152, %151 : vector<2x32xf32>
    %154 = arith.divf %152, %153 : vector<2x32xf32>
    %155 = vector.extract_strided_slice %136 {offsets = [0, 64], sizes = [2, 32], strides = [1, 1]} : vector<2x96xf32> to vector<2x32xf32>
    %156 = vector.extract_strided_slice %137 {offsets = [0, 64], sizes = [2, 32], strides = [1, 1]} : vector<2x96xf32> to vector<2x32xf32>
    %157 = arith.mulf %146, %156 : vector<2x32xf32>
    %158 = arith.addf %155, %157 : vector<2x32xf32>
    %159 = math.tanh %158 : vector<2x32xf32>
    %160 = arith.subf %138, %159 : vector<2x32xf32>
    %161 = arith.mulf %154, %160 : vector<2x32xf32>
    %162 = arith.addf %159, %161 : vector<2x32xf32>
    %163 = vector.broadcast %101 : f32 to vector<2x1xf32>
    %164 = arith.cmpf olt, %163, %3 : vector<2x1xf32>
    %cst_32 = arith.constant 8.000000e+00 : f32
    %165 = vector.broadcast %cst_32 : f32 to vector<2x1xf32>
    %166 = arith.subf %165, %3 : vector<2x1xf32>
    %167 = vector.broadcast %101 : f32 to vector<2x1xf32>
    %168 = arith.cmpf oge, %167, %166 : vector<2x1xf32>
    %169 = vector.extract_strided_slice %102 {offsets = [0, 0], sizes = [2, 32], strides = [1, 1]} : vector<2x64xf32> to vector<2x32xf32>
    %170 = vector.shape_cast %164 : vector<2x1xi1> to vector<2x1xi1>
    %171 = vector.broadcast %170 : vector<2x1xi1> to vector<2x32xi1>
    %172 = arith.select %171, %135, %169 : vector<2x32xi1>, vector<2x32xf32>
    %173 = vector.extract_strided_slice %102 {offsets = [0, 32], sizes = [2, 32], strides = [1, 1]} : vector<2x64xf32> to vector<2x32xf32>
    %174 = vector.shape_cast %168 : vector<2x1xi1> to vector<2x1xi1>
    %175 = vector.broadcast %174 : vector<2x1xi1> to vector<2x32xi1>
    %176 = arith.select %175, %162, %173 : vector<2x32xi1>, vector<2x32xf32>
    %177 = tpu.concatenate %172, %176 in 1 : vector<2x32xf32>, vector<2x32xf32> -> vector<2x64xf32>
    %c0_33 = arith.constant 0 : index
    %c0_34 = arith.constant 0 : index
    %178 = vector.load %arg7[%c0_33, %c0_34] : memref<2x64xf32, #tpu.memory_space<vmem>>, vector<2x64xf32>
    tpu.vector_store %arg7[%c0_33, %c0_34], %177 {strides = array<i32>} : memref<2x64xf32, #tpu.memory_space<vmem>>, vector<2x64xf32>,
    %cst_35 = arith.constant 0.000000e+00 : f32
    %179 = vector.shape_cast %164 : vector<2x1xi1> to vector<2x1xi1>
    %180 = vector.broadcast %179 : vector<2x1xi1> to vector<2x32xi1>
    %181 = vector.broadcast %cst_35 : f32 to vector<2x32xf32>
    %182 = arith.select %180, %172, %181 : vector<2x32xi1>, vector<2x32xf32>
    %cst_36 = arith.constant 0.000000e+00 : f32
    %183 = vector.shape_cast %168 : vector<2x1xi1> to vector<2x1xi1>
    %184 = vector.broadcast %183 : vector<2x1xi1> to vector<2x32xi1>
    %185 = vector.broadcast %cst_36 : f32 to vector<2x32xf32>
    %186 = arith.select %184, %176, %185 : vector<2x32xi1>, vector<2x32xf32>
    %187 = tpu.concatenate %182, %186 in 1 : vector<2x32xf32>, vector<2x32xf32> -> vector<2x64xf32>
    %188 = arith.index_cast %c1_i32 : i32 to index
    %c0_37 = arith.constant 0 : index
    %c0_38 = arith.constant 0 : index
    %189 = vector.load %arg5[%188, %c0_37, %c0_38] : memref<4x2x64xf32, #tpu.memory_space<vmem>>, vector<1x2x64xf32>
    %190 = vector.shape_cast %189 : vector<1x2x64xf32> to vector<2x64xf32>
    %191 = vector.shape_cast %187 : vector<2x64xf32> to vector<1x2x64xf32>
    tpu.vector_store %arg5[%188, %c0_37, %c0_38], %191 {strides = array<i32>} : memref<4x2x64xf32, #tpu.memory_space<vmem>>, vector<1x2x64xf32>,
    %c2_i32 = arith.constant 2 : i32
    %c4_i32_39 = arith.constant 4 : i32
    %192 = arith.muli %arg0, %c4_i32_39 : i32
    %193 = arith.addi %192, %c2_i32 : i32
    %194 = arith.sitofp %193 : i32 to f32
    %c0_40 = arith.constant 0 : index
    %c0_41 = arith.constant 0 : index
    %195 = vector.load %arg7[%c0_40, %c0_41] : memref<2x64xf32, #tpu.memory_space<vmem>>, vector<2x64xf32>
    %196 = arith.index_cast %c2_i32 : i32 to index
    %c0_42 = arith.constant 0 : index
    %c0_43 = arith.constant 0 : index
    %197 = vector.load %arg2[%196, %c0_42, %c0_43] : memref<4x2x192xf32, #tpu.memory_space<vmem>>, vector<1x2x192xf32>
    %198 = vector.shape_cast %197 : vector<1x2x192xf32> to vector<2x192xf32>
    %cst_44 = arith.constant dense<0.000000e+00> : vector<2x192xf32>
    %199 = tpu.matmul %195, %4, %cst_44 {dimension_numbers = #tpu.dot_dimension_numbers<[1], [0], [0], [1], [0, 0, 1, 1], [], []>} : vector<2x64xf32>, vector<64x192xf32>, vector<2x192xf32> -> vector<2x192xf32>
    %200 = vector.broadcast %5 : vector<1x192xf32> to vector<2x192xf32>
    %201 = arith.addf %199, %200 : vector<2x192xf32>
    %202 = vector.extract_strided_slice %198 {offsets = [0, 0], sizes = [2, 96], strides = [1, 1]} : vector<2x192xf32> to vector<2x96xf32>
    %203 = vector.extract_strided_slice %201 {offsets = [0, 0], sizes = [2, 96], strides = [1, 1]} : vector<2x192xf32> to vector<2x96xf32>
    %204 = vector.extract_strided_slice %195 {offsets = [0, 0], sizes = [2, 32], strides = [1, 1]} : vector<2x64xf32> to vector<2x32xf32>
    %205 = vector.extract_strided_slice %202 {offsets = [0, 0], sizes = [2, 32], strides = [1, 1]} : vector<2x96xf32> to vector<2x32xf32>
    %206 = vector.extract_strided_slice %203 {offsets = [0, 0], sizes = [2, 32], strides = [1, 1]} : vector<2x96xf32> to vector<2x32xf32>
    %207 = arith.addf %205, %206 : vector<2x32xf32>
    %208 = arith.negf %207 : vector<2x32xf32>
    %209 = math.exp %208 : vector<2x32xf32>
    %cst_45 = arith.constant 1.000000e+00 : f32
    %210 = vector.broadcast %cst_45 : f32 to vector<2x32xf32>
    %211 = arith.addf %210, %209 : vector<2x32xf32>
    %212 = arith.divf %210, %211 : vector<2x32xf32>
    %213 = vector.extract_strided_slice %202 {offsets = [0, 32], sizes = [2, 32], strides = [1, 1]} : vector<2x96xf32> to vector<2x32xf32>
    %214 = vector.extract_strided_slice %203 {offsets = [0, 32], sizes = [2, 32], strides = [1, 1]} : vector<2x96xf32> to vector<2x32xf32>
    %215 = arith.addf %213, %214 : vector<2x32xf32>
    %216 = arith.negf %215 : vector<2x32xf32>
    %217 = math.exp %216 : vector<2x32xf32>
    %cst_46 = arith.constant 1.000000e+00 : f32
    %218 = vector.broadcast %cst_46 : f32 to vector<2x32xf32>
    %219 = arith.addf %218, %217 : vector<2x32xf32>
    %220 = arith.divf %218, %219 : vector<2x32xf32>
    %221 = vector.extract_strided_slice %202 {offsets = [0, 64], sizes = [2, 32], strides = [1, 1]} : vector<2x96xf32> to vector<2x32xf32>
    %222 = vector.extract_strided_slice %203 {offsets = [0, 64], sizes = [2, 32], strides = [1, 1]} : vector<2x96xf32> to vector<2x32xf32>
    %223 = arith.mulf %212, %222 : vector<2x32xf32>
    %224 = arith.addf %221, %223 : vector<2x32xf32>
    %225 = math.tanh %224 : vector<2x32xf32>
    %226 = arith.subf %204, %225 : vector<2x32xf32>
    %227 = arith.mulf %220, %226 : vector<2x32xf32>
    %228 = arith.addf %225, %227 : vector<2x32xf32>
    %229 = vector.extract_strided_slice %198 {offsets = [0, 96], sizes = [2, 96], strides = [1, 1]} : vector<2x192xf32> to vector<2x96xf32>
    %230 = vector.extract_strided_slice %201 {offsets = [0, 96], sizes = [2, 96], strides = [1, 1]} : vector<2x192xf32> to vector<2x96xf32>
    %231 = vector.extract_strided_slice %195 {offsets = [0, 32], sizes = [2, 32], strides = [1, 1]} : vector<2x64xf32> to vector<2x32xf32>
    %232 = vector.extract_strided_slice %229 {offsets = [0, 0], sizes = [2, 32], strides = [1, 1]} : vector<2x96xf32> to vector<2x32xf32>
    %233 = vector.extract_strided_slice %230 {offsets = [0, 0], sizes = [2, 32], strides = [1, 1]} : vector<2x96xf32> to vector<2x32xf32>
    %234 = arith.addf %232, %233 : vector<2x32xf32>
    %235 = arith.negf %234 : vector<2x32xf32>
    %236 = math.exp %235 : vector<2x32xf32>
    %cst_47 = arith.constant 1.000000e+00 : f32
    %237 = vector.broadcast %cst_47 : f32 to vector<2x32xf32>
    %238 = arith.addf %237, %236 : vector<2x32xf32>
    %239 = arith.divf %237, %238 : vector<2x32xf32>
    %240 = vector.extract_strided_slice %229 {offsets = [0, 32], sizes = [2, 32], strides = [1, 1]} : vector<2x96xf32> to vector<2x32xf32>
    %241 = vector.extract_strided_slice %230 {offsets = [0, 32], sizes = [2, 32], strides = [1, 1]} : vector<2x96xf32> to vector<2x32xf32>
    %242 = arith.addf %240, %241 : vector<2x32xf32>
    %243 = arith.negf %242 : vector<2x32xf32>
    %244 = math.exp %243 : vector<2x32xf32>
    %cst_48 = arith.constant 1.000000e+00 : f32
    %245 = vector.broadcast %cst_48 : f32 to vector<2x32xf32>
    %246 = arith.addf %245, %244 : vector<2x32xf32>
    %247 = arith.divf %245, %246 : vector<2x32xf32>
    %248 = vector.extract_strided_slice %229 {offsets = [0, 64], sizes = [2, 32], strides = [1, 1]} : vector<2x96xf32> to vector<2x32xf32>
    %249 = vector.extract_strided_slice %230 {offsets = [0, 64], sizes = [2, 32], strides = [1, 1]} : vector<2x96xf32> to vector<2x32xf32>
    %250 = arith.mulf %239, %249 : vector<2x32xf32>
    %251 = arith.addf %248, %250 : vector<2x32xf32>
    %252 = math.tanh %251 : vector<2x32xf32>
    %253 = arith.subf %231, %252 : vector<2x32xf32>
    %254 = arith.mulf %247, %253 : vector<2x32xf32>
    %255 = arith.addf %252, %254 : vector<2x32xf32>
    %256 = vector.broadcast %194 : f32 to vector<2x1xf32>
    %257 = arith.cmpf olt, %256, %3 : vector<2x1xf32>
    %cst_49 = arith.constant 8.000000e+00 : f32
    %258 = vector.broadcast %cst_49 : f32 to vector<2x1xf32>
    %259 = arith.subf %258, %3 : vector<2x1xf32>
    %260 = vector.broadcast %194 : f32 to vector<2x1xf32>
    %261 = arith.cmpf oge, %260, %259 : vector<2x1xf32>
    %262 = vector.extract_strided_slice %195 {offsets = [0, 0], sizes = [2, 32], strides = [1, 1]} : vector<2x64xf32> to vector<2x32xf32>
    %263 = vector.shape_cast %257 : vector<2x1xi1> to vector<2x1xi1>
    %264 = vector.broadcast %263 : vector<2x1xi1> to vector<2x32xi1>
    %265 = arith.select %264, %228, %262 : vector<2x32xi1>, vector<2x32xf32>
    %266 = vector.extract_strided_slice %195 {offsets = [0, 32], sizes = [2, 32], strides = [1, 1]} : vector<2x64xf32> to vector<2x32xf32>
    %267 = vector.shape_cast %261 : vector<2x1xi1> to vector<2x1xi1>
    %268 = vector.broadcast %267 : vector<2x1xi1> to vector<2x32xi1>
    %269 = arith.select %268, %255, %266 : vector<2x32xi1>, vector<2x32xf32>
    %270 = tpu.concatenate %265, %269 in 1 : vector<2x32xf32>, vector<2x32xf32> -> vector<2x64xf32>
    %c0_50 = arith.constant 0 : index
    %c0_51 = arith.constant 0 : index
    %271 = vector.load %arg7[%c0_50, %c0_51] : memref<2x64xf32, #tpu.memory_space<vmem>>, vector<2x64xf32>
    tpu.vector_store %arg7[%c0_50, %c0_51], %270 {strides = array<i32>} : memref<2x64xf32, #tpu.memory_space<vmem>>, vector<2x64xf32>,
    %cst_52 = arith.constant 0.000000e+00 : f32
    %272 = vector.shape_cast %257 : vector<2x1xi1> to vector<2x1xi1>
    %273 = vector.broadcast %272 : vector<2x1xi1> to vector<2x32xi1>
    %274 = vector.broadcast %cst_52 : f32 to vector<2x32xf32>
    %275 = arith.select %273, %265, %274 : vector<2x32xi1>, vector<2x32xf32>
    %cst_53 = arith.constant 0.000000e+00 : f32
    %276 = vector.shape_cast %261 : vector<2x1xi1> to vector<2x1xi1>
    %277 = vector.broadcast %276 : vector<2x1xi1> to vector<2x32xi1>
    %278 = vector.broadcast %cst_53 : f32 to vector<2x32xf32>
    %279 = arith.select %277, %269, %278 : vector<2x32xi1>, vector<2x32xf32>
    %280 = tpu.concatenate %275, %279 in 1 : vector<2x32xf32>, vector<2x32xf32> -> vector<2x64xf32>
    %281 = arith.index_cast %c2_i32 : i32 to index
    %c0_54 = arith.constant 0 : index
    %c0_55 = arith.constant 0 : index
    %282 = vector.load %arg5[%281, %c0_54, %c0_55] : memref<4x2x64xf32, #tpu.memory_space<vmem>>, vector<1x2x64xf32>
    %283 = vector.shape_cast %282 : vector<1x2x64xf32> to vector<2x64xf32>
    %284 = vector.shape_cast %280 : vector<2x64xf32> to vector<1x2x64xf32>
    tpu.vector_store %arg5[%281, %c0_54, %c0_55], %284 {strides = array<i32>} : memref<4x2x64xf32, #tpu.memory_space<vmem>>, vector<1x2x64xf32>,
    %c3_i32 = arith.constant 3 : i32
    %c4_i32_56 = arith.constant 4 : i32
    %285 = arith.muli %arg0, %c4_i32_56 : i32
    %286 = arith.addi %285, %c3_i32 : i32
    %287 = arith.sitofp %286 : i32 to f32
    %c0_57 = arith.constant 0 : index
    %c0_58 = arith.constant 0 : index
    %288 = vector.load %arg7[%c0_57, %c0_58] : memref<2x64xf32, #tpu.memory_space<vmem>>, vector<2x64xf32>
    %289 = arith.index_cast %c3_i32 : i32 to index
    %c0_59 = arith.constant 0 : index
    %c0_60 = arith.constant 0 : index
    %290 = vector.load %arg2[%289, %c0_59, %c0_60] : memref<4x2x192xf32, #tpu.memory_space<vmem>>, vector<1x2x192xf32>
    %291 = vector.shape_cast %290 : vector<1x2x192xf32> to vector<2x192xf32>
    %cst_61 = arith.constant dense<0.000000e+00> : vector<2x192xf32>
    %292 = tpu.matmul %288, %4, %cst_61 {dimension_numbers = #tpu.dot_dimension_numbers<[1], [0], [0], [1], [0, 0, 1, 1], [], []>} : vector<2x64xf32>, vector<64x192xf32>, vector<2x192xf32> -> vector<2x192xf32>
    %293 = vector.broadcast %5 : vector<1x192xf32> to vector<2x192xf32>
    %294 = arith.addf %292, %293 : vector<2x192xf32>
    %295 = vector.extract_strided_slice %291 {offsets = [0, 0], sizes = [2, 96], strides = [1, 1]} : vector<2x192xf32> to vector<2x96xf32>
    %296 = vector.extract_strided_slice %294 {offsets = [0, 0], sizes = [2, 96], strides = [1, 1]} : vector<2x192xf32> to vector<2x96xf32>
    %297 = vector.extract_strided_slice %288 {offsets = [0, 0], sizes = [2, 32], strides = [1, 1]} : vector<2x64xf32> to vector<2x32xf32>
    %298 = vector.extract_strided_slice %295 {offsets = [0, 0], sizes = [2, 32], strides = [1, 1]} : vector<2x96xf32> to vector<2x32xf32>
    %299 = vector.extract_strided_slice %296 {offsets = [0, 0], sizes = [2, 32], strides = [1, 1]} : vector<2x96xf32> to vector<2x32xf32>
    %300 = arith.addf %298, %299 : vector<2x32xf32>
    %301 = arith.negf %300 : vector<2x32xf32>
    %302 = math.exp %301 : vector<2x32xf32>
    %cst_62 = arith.constant 1.000000e+00 : f32
    %303 = vector.broadcast %cst_62 : f32 to vector<2x32xf32>
    %304 = arith.addf %303, %302 : vector<2x32xf32>
    %305 = arith.divf %303, %304 : vector<2x32xf32>
    %306 = vector.extract_strided_slice %295 {offsets = [0, 32], sizes = [2, 32], strides = [1, 1]} : vector<2x96xf32> to vector<2x32xf32>
    %307 = vector.extract_strided_slice %296 {offsets = [0, 32], sizes = [2, 32], strides = [1, 1]} : vector<2x96xf32> to vector<2x32xf32>
    %308 = arith.addf %306, %307 : vector<2x32xf32>
    %309 = arith.negf %308 : vector<2x32xf32>
    %310 = math.exp %309 : vector<2x32xf32>
    %cst_63 = arith.constant 1.000000e+00 : f32
    %311 = vector.broadcast %cst_63 : f32 to vector<2x32xf32>
    %312 = arith.addf %311, %310 : vector<2x32xf32>
    %313 = arith.divf %311, %312 : vector<2x32xf32>
    %314 = vector.extract_strided_slice %295 {offsets = [0, 64], sizes = [2, 32], strides = [1, 1]} : vector<2x96xf32> to vector<2x32xf32>
    %315 = vector.extract_strided_slice %296 {offsets = [0, 64], sizes = [2, 32], strides = [1, 1]} : vector<2x96xf32> to vector<2x32xf32>
    %316 = arith.mulf %305, %315 : vector<2x32xf32>
    %317 = arith.addf %314, %316 : vector<2x32xf32>
    %318 = math.tanh %317 : vector<2x32xf32>
    %319 = arith.subf %297, %318 : vector<2x32xf32>
    %320 = arith.mulf %313, %319 : vector<2x32xf32>
    %321 = arith.addf %318, %320 : vector<2x32xf32>
    %322 = vector.extract_strided_slice %291 {offsets = [0, 96], sizes = [2, 96], strides = [1, 1]} : vector<2x192xf32> to vector<2x96xf32>
    %323 = vector.extract_strided_slice %294 {offsets = [0, 96], sizes = [2, 96], strides = [1, 1]} : vector<2x192xf32> to vector<2x96xf32>
    %324 = vector.extract_strided_slice %288 {offsets = [0, 32], sizes = [2, 32], strides = [1, 1]} : vector<2x64xf32> to vector<2x32xf32>
    %325 = vector.extract_strided_slice %322 {offsets = [0, 0], sizes = [2, 32], strides = [1, 1]} : vector<2x96xf32> to vector<2x32xf32>
    %326 = vector.extract_strided_slice %323 {offsets = [0, 0], sizes = [2, 32], strides = [1, 1]} : vector<2x96xf32> to vector<2x32xf32>
    %327 = arith.addf %325, %326 : vector<2x32xf32>
    %328 = arith.negf %327 : vector<2x32xf32>
    %329 = math.exp %328 : vector<2x32xf32>
    %cst_64 = arith.constant 1.000000e+00 : f32
    %330 = vector.broadcast %cst_64 : f32 to vector<2x32xf32>
    %331 = arith.addf %330, %329 : vector<2x32xf32>
    %332 = arith.divf %330, %331 : vector<2x32xf32>
    %333 = vector.extract_strided_slice %322 {offsets = [0, 32], sizes = [2, 32], strides = [1, 1]} : vector<2x96xf32> to vector<2x32xf32>
    %334 = vector.extract_strided_slice %323 {offsets = [0, 32], sizes = [2, 32], strides = [1, 1]} : vector<2x96xf32> to vector<2x32xf32>
    %335 = arith.addf %333, %334 : vector<2x32xf32>
    %336 = arith.negf %335 : vector<2x32xf32>
    %337 = math.exp %336 : vector<2x32xf32>
    %cst_65 = arith.constant 1.000000e+00 : f32
    %338 = vector.broadcast %cst_65 : f32 to vector<2x32xf32>
    %339 = arith.addf %338, %337 : vector<2x32xf32>
    %340 = arith.divf %338, %339 : vector<2x32xf32>
    %341 = vector.extract_strided_slice %322 {offsets = [0, 64], sizes = [2, 32], strides = [1, 1]} : vector<2x96xf32> to vector<2x32xf32>
    %342 = vector.extract_strided_slice %323 {offsets = [0, 64], sizes = [2, 32], strides = [1, 1]} : vector<2x96xf32> to vector<2x32xf32>
    %343 = arith.mulf %332, %342 : vector<2x32xf32>
    %344 = arith.addf %341, %343 : vector<2x32xf32>
    %345 = math.tanh %344 : vector<2x32xf32>
    %346 = arith.subf %324, %345 : vector<2x32xf32>
    %347 = arith.mulf %340, %346 : vector<2x32xf32>
    %348 = arith.addf %345, %347 : vector<2x32xf32>
    %349 = vector.broadcast %287 : f32 to vector<2x1xf32>
    %350 = arith.cmpf olt, %349, %3 : vector<2x1xf32>
    %cst_66 = arith.constant 8.000000e+00 : f32
    %351 = vector.broadcast %cst_66 : f32 to vector<2x1xf32>
    %352 = arith.subf %351, %3 : vector<2x1xf32>
    %353 = vector.broadcast %287 : f32 to vector<2x1xf32>
    %354 = arith.cmpf oge, %353, %352 : vector<2x1xf32>
    %355 = vector.extract_strided_slice %288 {offsets = [0, 0], sizes = [2, 32], strides = [1, 1]} : vector<2x64xf32> to vector<2x32xf32>
    %356 = vector.shape_cast %350 : vector<2x1xi1> to vector<2x1xi1>
    %357 = vector.broadcast %356 : vector<2x1xi1> to vector<2x32xi1>
    %358 = arith.select %357, %321, %355 : vector<2x32xi1>, vector<2x32xf32>
    %359 = vector.extract_strided_slice %288 {offsets = [0, 32], sizes = [2, 32], strides = [1, 1]} : vector<2x64xf32> to vector<2x32xf32>
    %360 = vector.shape_cast %354 : vector<2x1xi1> to vector<2x1xi1>
    %361 = vector.broadcast %360 : vector<2x1xi1> to vector<2x32xi1>
    %362 = arith.select %361, %348, %359 : vector<2x32xi1>, vector<2x32xf32>
    %363 = tpu.concatenate %358, %362 in 1 : vector<2x32xf32>, vector<2x32xf32> -> vector<2x64xf32>
    %c0_67 = arith.constant 0 : index
    %c0_68 = arith.constant 0 : index
    %364 = vector.load %arg7[%c0_67, %c0_68] : memref<2x64xf32, #tpu.memory_space<vmem>>, vector<2x64xf32>
    tpu.vector_store %arg7[%c0_67, %c0_68], %363 {strides = array<i32>} : memref<2x64xf32, #tpu.memory_space<vmem>>, vector<2x64xf32>,
    %cst_69 = arith.constant 0.000000e+00 : f32
    %365 = vector.shape_cast %350 : vector<2x1xi1> to vector<2x1xi1>
    %366 = vector.broadcast %365 : vector<2x1xi1> to vector<2x32xi1>
    %367 = vector.broadcast %cst_69 : f32 to vector<2x32xf32>
    %368 = arith.select %366, %358, %367 : vector<2x32xi1>, vector<2x32xf32>
    %cst_70 = arith.constant 0.000000e+00 : f32
    %369 = vector.shape_cast %354 : vector<2x1xi1> to vector<2x1xi1>
    %370 = vector.broadcast %369 : vector<2x1xi1> to vector<2x32xi1>
    %371 = vector.broadcast %cst_70 : f32 to vector<2x32xf32>
    %372 = arith.select %370, %362, %371 : vector<2x32xi1>, vector<2x32xf32>
    %373 = tpu.concatenate %368, %372 in 1 : vector<2x32xf32>, vector<2x32xf32> -> vector<2x64xf32>
    %374 = arith.index_cast %c3_i32 : i32 to index
    %c0_71 = arith.constant 0 : index
    %c0_72 = arith.constant 0 : index
    %375 = vector.load %arg5[%374, %c0_71, %c0_72] : memref<4x2x64xf32, #tpu.memory_space<vmem>>, vector<1x2x64xf32>
    %376 = vector.shape_cast %375 : vector<1x2x64xf32> to vector<2x64xf32>
    %377 = vector.shape_cast %373 : vector<2x64xf32> to vector<1x2x64xf32>
    tpu.vector_store %arg5[%374, %c0_71, %c0_72], %377 {strides = array<i32>} : memref<4x2x64xf32, #tpu.memory_space<vmem>>, vector<1x2x64xf32>,
    %c4_i32_73 = arith.constant 4 : i32
    %c1_i32_74 = arith.constant 1 : i32
    %378 = arith.cmpi eq, %arg0, %c1_i32_74 : i32
    %379 = arith.extui %378 : i1 to i32
    %c0_i32_75 = arith.constant 0 : i32
    %380 = arith.cmpi ne, %379, %c0_i32_75 : i32
    scf.if %380 {
      %c0_76 = arith.constant 0 : index
      %c0_77 = arith.constant 0 : index
      %381 = vector.load %arg7[%c0_76, %c0_77] : memref<2x64xf32, #tpu.memory_space<vmem>>, vector<2x64xf32>
      %c0_78 = arith.constant 0 : index
      %c0_79 = arith.constant 0 : index
      %382 = vector.load %arg6[%c0_78, %c0_79] : memref<2x64xf32, #tpu.memory_space<vmem>>, vector<2x64xf32>
      tpu.vector_store %arg6[%c0_78, %c0_79], %381 {strides = array<i32>} : memref<2x64xf32, #tpu.memory_space<vmem>>, vector<2x64xf32>,
    } else {
    }
    return
  }
  func.func @transform_0(%arg0: i32) -> (i32, i32) {
    %c0_i32 = arith.constant 0 : i32
    %c0_i32_0 = arith.constant 0 : i32
    %c0_i32_1 = arith.constant 0 : i32
    return %c0_i32, %c0_i32_0 : i32, i32
  }
  func.func @transform_1(%arg0: i32) -> (i32, i32, i32) {
    %c0_i32 = arith.constant 0 : i32
    %c0_i32_0 = arith.constant 0 : i32
    %c0_i32_1 = arith.constant 0 : i32
    return %arg0, %c0_i32, %c0_i32_0 : i32, i32, i32
  }
  func.func @transform_2(%arg0: i32) -> (i32, i32) {
    %c0_i32 = arith.constant 0 : i32
    %c0_i32_0 = arith.constant 0 : i32
    %c0_i32_1 = arith.constant 0 : i32
    return %c0_i32, %c0_i32_0 : i32, i32
  }
  func.func @transform_3(%arg0: i32) -> (i32, i32) {
    %c0_i32 = arith.constant 0 : i32
    %c0_i32_0 = arith.constant 0 : i32
    %c0_i32_1 = arith.constant 0 : i32
    return %c0_i32, %c0_i32_0 : i32, i32
  }
  func.func @transform_4(%arg0: i32) -> (i32, i32, i32) {
    %c0_i32 = arith.constant 0 : i32
    %c0_i32_0 = arith.constant 0 : i32
    %c0_i32_1 = arith.constant 0 : i32
    return %arg0, %c0_i32, %c0_i32_0 : i32, i32, i32
  }
  func.func @transform_5(%arg0: i32) -> (i32, i32) {
    %c0_i32 = arith.constant 0 : i32
    %c0_i32_0 = arith.constant 0 : i32
    %c0_i32_1 = arith.constant 0 : i32
    return %c0_i32, %c0_i32_0 : i32, i32
  }
}

</mosaic_0001>

<bundles_post_ra>
// kernel: tpu_custom_call.1
= control target key start
LH: loop header
LB: loop body
LE: loop exit
PB: predicated region body
PF: predicated region fallthrough
CT: control target
= control target key end

     0   :  { %11 = vsyncpa [#allocation4], 0  ;;  %s2333_s0 = inlined_call_operand.vmem [shape: f32[2,1], index: 0, kind: input, shape index: {}]   ;;  %s2334_s1 = inlined_call_operand.hbm [shape: f32[8,2,192], index: 1, kind: input, shape index: {}]   ;;  %s2335_s2 = inlined_call_operand.hbm [shape: f32[64,192], index: 2, kind: input, shape index: {}]   ;;  %s2336_s3 = inlined_call_operand.vmem [shape: f32[1,192], index: 3, kind: input, shape index: {}]   ;;  %s2337_s4 = inlined_call_operand.hbm [shape: f32[8,2,64], index: 4, kind: output, shape index: {0}]   ;;  %s2338_s5 = inlined_call_operand.hbm [shape: f32[2,64], index: 5, kind: output, shape index: {1}]  }
   0x1   :  { %13 = vsyncpa [#allocation4 + $0x1], 0 }
   0x2   :  { %14 = vsyncpa [#allocation7], 0 }
   0x3   :  { %15 = vsyncpa [#allocation5], 0 }
   0x4   :  { %17 = vsyncpa [#allocation5 + $0x1], 0 }
   0x5   :  { %18 = vsyncpa [#allocation10], 0  ;;  %s1797_s18 = smov 0   ;;  %s1799_s19 = smov 0  }
   0x6   :  { %s1801_s20 = smov 0   ;;  %s1803_s21 = smov 0  }
   0x7 LB: > { %s1818_s22 = sadd.s32 4294967295, %s1749_s21   ;;  %s1358_s23 = sadd.s32 4294967294, %s1749_s21   ;;  %s1749_s21 = sphi %s1803_s21, %s2364_s21   ;;  %s1745_s20 = sphi %s1801_s20, %s2363_s20   ;;  %s1741_s19 = sphi %s1799_s19, %s2362_s19   ;;  %s1737_s18 = sphi %s1797_s18, %s2361_s18  }
   0x8   : > { %p65_p0 = scmp.ne.s32.totalorder %s1741_s19, %s1737_s18  ;;  %p2339_p1 = scmp.eq.s32.totalorder %s1818_s22, 0 }
   0x9   : > { %p137_p3 = scmp.eq.s32.totalorder %s1358_s23, 1  ;;  %p1359_p5 = scmp.ge.s32.totalorder %s1749_s21, 1 }
   0xa   : > { %p1827_p4 = por %p2339_p1, %p65_p0  ;;  %p165_p7 = scmp.lt.s32.totalorder %s1749_s21, 3 }
   0xb   : > { %p1832_p6 = por %p137_p3, %p65_p0  ;;  %s1751_s27 = smov [#allocation6]  }
   0xc   : > { %s2342_s24 = scalar_select %p1827_p4, 1, 0 }
   0xd   : > { %s2343_s25 = scalar_select %p1832_p6, 1, 0 }
   0xe   : > { %p1838_p9 = pnand %p1359_p5, %p165_p7  ;;  %s180_s28 = sshll.u32 %s1751_s27, 4  ;;  %s1842_s28 = int_to_ptr.vmem [resolvable:$true] %s180_s28 }
   0xf   : > { %s1854_s30 = sadd.s32 1, %s1749_s21   ;;  %s52_s6 = sadd.s32 1, %s1745_s20 }
  0x10   : > { %s2344_s26 = scalar_select %p1838_p9, 1, 0 }
  0x11   : > { %p1477_p10 = pneg %p1838_p9  ;;  %s49_s7 = ssub.s32 %s1749_s21, %s1854_s30 }
  0x12   : > { %s1591_s10 = scalar_lea.hbm %s2335_s2, 2048 }
  0x13   : > { %p1849_p12 = pnand %p1477_p10, %p2339_p1  ;;  %p1592_p13 = scmp.ne.s32.totalorder %s2335_s2, %s1591_s10 }
  0x14   : > { %p1598_p7 = scmp.lt.u32.totalorder %s1591_s10, %s2335_s2 }
  0x15   : > { %p1593_p0 = pneg %p1849_p12 }
  0x17   : > { %p1594_p3 = pnand %p1593_p0, %p1592_p13 }
  0x19   : > { %p1595_p5 = pneg %p1594_p3 }
  0x1b   : > { %p1600_p10 = pnand %p1598_p7, %p1595_p5 }
  0x1d   : > { %1603 = shalt.err (!%p1600_p10)
}
  0x1e   : > { %s1604_s15 = scalar_lea.vmem %s1842_s28, 2048  ;;  %p1612_p2 = scmp.lt.s32.totalorder %s1842_s28, %s1842_s28 }
  0x1f   : > { %p1605_p11 = scmp.ne.s32.totalorder %s1842_s28, %s1604_s15  ;;  %p1613_p6 = scmp.lt.s32.totalorder %s1604_s15, %s1604_s15 }
  0x21   : > { %p1607_p8 = pnand %p1605_p11, %p1593_p0  ;;  %p1614_p4 = por %p1613_p6, %p1612_p2 }
  0x23   : > { %p1608_p1 = pneg %p1607_p8 }
  0x25   : > { %p1615_p9 = pnand %p1614_p4, %p1608_p1 }
  0x27   : > { %1618 = shalt.err (!%p1615_p9)
}
  0x28   : > { %s1752_s16 = smov 256   ;;  %s1753_s17 = smov 16  }
  0x29   : > { %1480 = dma.hbm_to_vmem [thread:$0]  (!%p1849_p12), %s2335_s2, 2048, %s1842_s28, [#allocation7], %s1752_s16, %s1752_s16, %s1753_s17  }
  0x2a   : > { %p50_p2 = scmp.eq.s32.totalorder %s49_s7, 0  ;;  %p59_p1 = scmp.ne.s32.totalorder %s1745_s20, %s1741_s19 }
  0x2b   : > { %p60_p4 = scmp.eq.s32.totalorder %s1749_s21, 0  ;;  %p1490_p6 = scmp.lt.s32.totalorder %s1749_s21, 2 }
  0x2c   : > { %s1885_s8 = scalar_select %p50_p2, %s1745_s20, %s52_s6  }
  0x2d   : > { %p61_p8 = por %p60_p4, %p59_p1  ;;  %p2346_p9 = scmp.eq.s32.totalorder %s1818_s22, 1 }
  0x2e   : > { %s197_s10 = sand.u32 1, %s1745_s20   ;;  %s1399_s11 = sshll.u32 %s1749_s21, 8 }
  0x2f   : > { %p1889_p11 = por %p2346_p9, %p59_p1  ;;  %s1362_s12 = sshll.u32 %s197_s10, 4 }
  0x30   : > { %s1898_s14 = scalar_lea.hbm %s2334_s1, %s1399_s11  ;;  %s201_s28 = scalar_lea.vmem [#allocation3], %s1362_s12 }
  0x31   : > { %s209_s6 = sshll.u32 %s201_s28, 4  ;;  %p1900_p12 = pnand %p1490_p6, %p61_p8  ;;  %s1904_s6 = int_to_ptr.vmem [resolvable:$true] %s209_s6 }
  0x32   : > { %s1906_s15 = scalar_lea.sflag [#allocation4], %s197_s10  ;;  %s1619_s16 = scalar_lea.hbm %s1898_s14, 256 }
  0x33   : > { %p1620_p13 = scmp.ne.s32.totalorder %s1898_s14, %s1619_s16  ;;  %p1621_p0 = pneg %p1900_p12 }
  0x34   : > { %s1624_s27 = scalar_lea.hbm %s2334_s1, 512  ;;  %p1625_p7 = scmp.lt.u32.totalorder %s1898_s14, %s2334_s1 }
  0x35   : > { %p1622_p3 = pnand %p1621_p0, %p1620_p13  ;;  %p1626_p10 = scmp.lt.u32.totalorder %s1624_s27, %s1619_s16 }
  0x36   : > { %p1628_p1 = scmp.lt.u32.totalorder %s1619_s16, %s1898_s14 }
  0x37   : > { %p1623_p5 = pneg %p1622_p3  ;;  %p1627_p2 = por %p1626_p10, %p1625_p7 }
  0x39   : > { %p1629_p4 = por %p1628_p1, %p1627_p2 }
  0x3b   : > { %p1630_p6 = pnand %p1629_p4, %p1623_p5 }
  0x3d   : > { %1633 = shalt.err (!%p1630_p6)
}
  0x3e   : > { %s1634_s10 = scalar_lea.vmem %s1904_s6, 256  ;;  %s1754_s29 = smov [#allocation3]  }
  0x3f   : > { %p1635_p8 = scmp.ne.s32.totalorder %s1904_s6, %s1634_s10  ;;  %s1639_s13 = sshll.u32 %s1754_s29, 4  ;;  %s1640_s13 = int_to_ptr.vmem [resolvable:$false] %s1639_s13 }
  0x40   : > { %s1641_s28 = scalar_lea.vmem %s1640_s13, 512  ;;  %p1642_p3 = scmp.lt.s32.totalorder %s1904_s6, %s1640_s13 }
  0x41   : > { %p1637_p9 = pnand %p1635_p8, %p1621_p0  ;;  %p1643_p7 = scmp.lt.s32.totalorder %s1641_s28, %s1634_s10 }
  0x43   : > { %p1638_p13 = pneg %p1637_p9  ;;  %p1644_p10 = por %p1643_p7, %p1642_p3 }
  0x45   : > { %p1645_p2 = pnand %p1644_p10, %p1638_p13 }
  0x47   : > { %1648 = shalt.err (!%p1645_p2)
}
  0x48   : > { %s1755_s16 = smov 64   ;;  %s1756_s17 = smov 4  }
  0x49   : > { %1484 = dma.hbm_to_vmem [thread:$0]  (!%p1900_p12), %s1898_s14, 256, %s1904_s6, %s1906_s15, %s1755_s16, %s1755_s16, %s1756_s17  }
  0x4a   : > { %p2349_p0 = scmp.ne.s32.totalorder %s2344_s26, 0 }
  0x4b   : > { %s1937_s23 = sand.u32 (!%p2349_p0), 1, %s1741_s19   ;;  %p2350_p5 = scmp.ne.s32.totalorder (!%p2349_p0), %s2342_s24, 0 }
  0x4c   : > { %221 = sbr.rel (%p2349_p0) target bundleno = 3948 (0xf6c), region = 36  ;;  %s1367_s27 = sshll.u32 (!%p2349_p0), %s1937_s23, 4 }
  0x4d   : > { %s224_s11 = scalar_lea.sflag (!%p2349_p0), [#allocation4], %s1937_s23  ;;  %s1941_s12 = scalar_lea.vmem (!%p2349_p0), [#allocation3], %s1367_s27 }
  0x53   : > { %1720 = dma.done.wait (%p2350_p5), %s224_s11, 256  }
  0x54   : > { %1722 = vsyncadd (%p2350_p5), %s224_s11, 4294967040  ;;  %p2351_p12 = scmp.eq.s32.totalorder %s1818_s22, 0 }
  0x56   : > { %1724 = dma.done.wait (%p2351_p12), [#allocation7], 2048   ;;  %p2352_p1 = pmov %p2351_p12 }
  0x57   : > { %s1369_s26 = sshll.u32 %s1937_s23, 3  ;;  %p2353_p4 = scmp.ne.s32.totalorder %s1818_s22, 0 }
  0x58   : > { %1726 = vsyncadd (%p2352_p1), [#allocation7], 4294965248  ;;  %s1952_s14 = scalar_lea.vmem [#allocation8], %s1369_s26  ;;  %vm264_vm0 = vcmask (!%p2353_p4), 517120   ;;  %v1757_v0 = vmov (!%p2353_p4), 0.0  }
  0x59   : > { %263 = sbr.rel (%p2353_p4) target bundleno = 96 (0x60), region = 48  ;;  %265 = vst.msk [vmem:[#allocation2] sm:$0x3] (!%p2353_p4), %vm264_vm0, %v1757_v0 }
  0x60 PF: > { %v268_v1 = vld [vmem:[#allocation6 + $0x8] sm:$0xff]  ;;  %v270_v2 = vld [vmem:[#allocation6 + $0x18] sm:$0xff]  ;;  %v267_v3 = vld [vmem:[#allocation6] sm:$0xff]  ;;  %v1758_v8 = vmov 0.0   ;;  %vm299_vm1 = vcmask 523264   ;;  %v289_v27 = vlaneseq  ;;  %s1760_s7 = smov 64  }
  0x61   : > { %v1401_v4 = vpack.c.bf16 %v270_v2, %v268_v1  ;;  %v269_v5 = vld [vmem:[#allocation6 + $0x10] sm:$0xff]  ;;  %v272_v6 = vld [vmem:[#allocation6 + $0x28] sm:$0xff]  ;;  %v274_v7 = vld [vmem:[#allocation6 + $0x38] sm:$0xff]  ;;  %367 = vmatprep.mubr.f32.mxu0 %v1758_v8  ;;  %603 = vmatprep.mubr.f32.mxu1 %v1758_v8  ;;  %v1759_v29 = vmov 1983009808   ;;  %s1761_s15 = smov 96  }
  0x62   : > { %v1958_v9 = vpack.c.bf16 %v269_v5, %v267_v3  ;;  %v1960_v10 = vpack.c.bf16 %v274_v7, %v272_v6  ;;  %v271_v11 = vld [vmem:[#allocation6 + $0x20] sm:$0xff]  ;;  %v273_v12 = vld [vmem:[#allocation6 + $0x30] sm:$0xff]  ;;  %v276_v13 = vld [vmem:[#allocation6 + $0x48] sm:$0xff]  ;;  %v290_v28 = vshrl.u32 %v289_v27, 7  ;;  %v383_v30 = vunpack.c.l.s4 %v1759_v29  ;;  %s1762_s10 = smov 32   ;;  %s2021_s29 = sshll.u32 %s1818_s22, 2 }
  0x63   : > { %1402 = vmatprep.subr.bf16.mxu0 %v1401_v4  ;;  %v278_v14 = vld [vmem:[#allocation6 + $0x58] sm:$0xff]  ;;  %1418 = vmatprep.subr.bf16.mxu1 %v1401_v4  ;;  %v1963_v15 = vpack.c.bf16 %v273_v12, %v271_v11  ;;  %v275_v17 = vld [vmem:[#allocation6 + $0x40] sm:$0xff]  ;;  %v277_v18 = vld [vmem:[#allocation6 + $0x50] sm:$0xff]  ;;  %v1763_v60 = vmov 0   ;;  %s285_s16 = scvt.s32.f32 %s2021_s29  ;;  %vm519_vm6 = vcmask 261120   ;;  %vm521_vm7 = vcmask 517120  }
  0x64   : > { %1404 = vmatpush1.bf16.msra.mxu0 %v1958_v9  ;;  %1420 = vmatpush1.bf16.msra.mxu1 %v1958_v9  ;;  %v1967_v16 = vpack.c.bf16 %v278_v14, %v276_v13  ;;  %v280_v19 = vld [vmem:[#allocation6 + $0x68] sm:$0xff]  ;;  %v282_v20 = vld [vmem:[#allocation6 + $0x78] sm:$0xff]  ;;  %v1971_v21 = vpack.c.bf16 %v277_v18, %v275_v17  ;;  %v279_v23 = vld [vmem:[#allocation6 + $0x60] sm:$0xff]  ;;  %v291_v31 = vsub.s32 0, %v290_v28  ;;  %v295_v33 = vsub.s32 1, %v290_v28  ;;  %s531_s17 = sadd.s32 1, %s2021_s29 }
  0x65   : > { %1406 = vmatprep.subr.bf16.mxu0 %v1960_v10  ;;  %1422 = vmatprep.subr.bf16.mxu1 %v1960_v10  ;;  %v1975_v22 = vpack.c.bf16 %v282_v20, %v280_v19  ;;  %v281_v24 = vld [vmem:[#allocation6 + $0x70] sm:$0xff]  ;;  %v1985_v26 = vld [vmem:[#allocation2] sm:$0x3]  ;;  %v283_v32 = vld [vmem:[%s2336_s3] sm:$0x3]  ;;  %v384_v34 = vunpack.c.0.s8 %v383_v30  ;;  %v485_v1 = vstv %s285_s16  ;;  %s532_s27 = scvt.s32.f32 %s531_s17  ;;  %s765_s11 = sadd.s32 2, %s2021_s29 }
  0x66   : > { %v1979_v25 = vpack.c.bf16 %v281_v24, %v279_v23  ;;  %v2001_v35 = vrot.slane %v283_v32, %v291_v31  ;;  %v2003_v36 = vrot.slane %v283_v32, %v295_v33  ;;  %v287_v44 = vld [vmem:[%s1941_s12] sm:$0xf]  ;;  %1541 = vset.pattern.permute.xlu0 %v1763_v60  ;;  %1542 = vset.pattern.permute.xlu1 %v1763_v60  ;;  %v2028_v61 = vld [vmem:[%s2333_s0] sm:$0x3]  ;;  %s766_s26 = scvt.s32.f32 %s765_s11  ;;  %p1390_p6 = scmp.ne.s32.totalorder %s1818_s22, 1 }
  0x67   : > { %v2005_v37 = vsub.s32 %v384_v34, %v290_v28  ;;  %v2033_v0 = vsub.f32 8.0, %v2028_v61  ;;  %vm486_vm3 = vcmp.lt.f32.partialorder %v485_v1, %v2028_v61  ;;  %v429_v19 = vrot.slane %v287_v44, 2 }
  0x68   : > { %1408 = vmatpush1.bf16.msra.mxu0 %v1963_v15  ;;  %1424 = vmatpush1.bf16.msra.mxu1 %v1963_v15  ;;  %v489_v18 = vsel %vm486_vm3, 1, %v1763_v60 }
  0x69   : > { %1410 = vmatprep.subr.bf16.mxu0 %v1967_v16  ;;  %1426 = vmatprep.subr.bf16.mxu1 %v1967_v16  ;;  %vm488_vm2 = vcmp.ge.f32.partialorder %v485_v1, %v2033_v0 }
  0x6c   : > { %1412 = vmatpush1.bf16.msra.mxu0 %v1971_v21  ;;  %1428 = vmatpush1.bf16.msra.mxu1 %v1971_v21 }
  0x6d   : > { %1414 = vmatprep.subr.bf16.mxu0 %v1975_v22  ;;  %1430 = vmatprep.subr.bf16.mxu1 %v1975_v22 }
  0x70   : > { %1416 = vmatpush1.bf16.msra.mxu0 %v1979_v25  ;;  %1432 = vmatpush1.bf16.msra.mxu1 %v1979_v25 }
  0x71   : > { %1434 = vmatprep.subr.bf16.mxu0 %v1401_v4  ;;  %1450 = vmatprep.subr.bf16.mxu1 %v1401_v4  ;;  %v506_v4 = vsel %vm488_vm2, 1, %v1763_v60 }
  0x73   : > { %1372 = vmatmul.mubr.msk.f32.vlgmr.msra.gmra.mrb[0].mxu0 %vm299_vm1, %v1985_v26 }
  0x74   : > { %1436 = vmatpush1.bf16.msra.mxu0 %v1958_v9  ;;  %837 = vmatprep.mubr.f32.mxu0 %v1758_v8 }
  0x75   : > { %1438 = vmatprep.subr.bf16.mxu0 %v1960_v10 }
  0x78   : > { %1440 = vmatpush1.bf16.msra.mxu0 %v1963_v15 }
  0x79   : > { %1442 = vmatprep.subr.bf16.mxu0 %v1967_v16 }
  0x7c   : > { %1444 = vmatpush1.bf16.msra.mxu0 %v1971_v21 }
  0x7d   : > { %1446 = vmatprep.subr.bf16.mxu0 %v1975_v22 }
  0x80   : > { %1448 = vmatpush1.bf16.msra.mxu0 %v1979_v25 }
 0x146   : > { %v369_v38 = vpop.f32.mrb[0].mxu0 }
 0x147   : > { %v370_v39 = vadd.f32 %v369_v38, %v2001_v35  ;;  %v371_v40 = vpop.f32.mrb[1].mxu0 }
 0x148   : > { %v2009_v41 = vadd.f32 %v371_v40, %v2003_v36 }
 0x149   : > { %v388_v42 = vrot.slane %v370_v39, %v2005_v37  ;;  %v374_v45 = vadd.f32 %v370_v39, %v287_v44 }
 0x14a   : > { %v445_v43 = vrot.slane %v2009_v41, %v2005_v37  ;;  %v431_v20 = vadd.f32 %v429_v19, %v2009_v41 }
 0x14b   : > { %389 = vrot.lane.b32.xlu0 %v388_v42, %s1760_s7  ;;  %v1373_v46 = vmul.f32 -1.442695, %v374_v45 }
 0x14c   : > { %446 = vrot.lane.b32.xlu1 %v445_v43, %s1760_s7  ;;  %v1374_v23 = vmul.f32 -1.442695, %v431_v20 }
 0x14d   : > { %1543 = vpow2.f32 %v1373_v46 }
 0x150   : > { %450 = vrot.lane.b32.xlu1 %v287_v44, %s1761_s15 }
 0x157   : > { %v1544_v47 = vpop.eup %1543 }
 0x158   : > { %v378_v48 = vadd.f32 1.0, %v1544_v47 }
 0x15a   : > { %1545 = vrcp.f32 %v378_v48 }
 0x164   : > { %v1546_v49 = vpop.eup %1545 }
 0x1bd   : > { %v390_v50 = vpop.permute.xlu0 %389 }
 0x1be   : > { %v392_v51 = vmul.f32 %v1546_v49, %v390_v50  ;;  %v447_v52 = vpop.permute.xlu1 %446 }
 0x1bf   : > { %v449_v53 = vmul.f32 %v1546_v49, %v447_v52 }
 0x1c0   : > { %394 = vrot.lane.b32.xlu0 %v392_v51, %s1760_s7 }
 0x1c2   : > { %v451_v54 = vpop.permute.xlu1 %450 }
 0x1c3   : > { %v452_v57 = vrot.slane %v451_v54, 2 }
 0x1c4   : > { %455 = vrot.lane.b32.xlu0 %v449_v53, %s1762_s10 }
 0x232   : > { %v395_v55 = vpop.permute.xlu0 %394 }
 0x233   : > { %v397_v56 = vadd.f32 %v395_v55, %v287_v44 }
 0x235   : > { %1547 = vtanh.f32 %v397_v56 }
 0x236   : > { %v456_v58 = vpop.permute.xlu0 %455 }
 0x237   : > { %v458_v59 = vadd.f32 %v456_v58, %v452_v57 }
 0x239   : > { %1549 = vtanh.f32 %v458_v59 }
 0x23a   : > { %1551 = vpow2.f32 %v1374_v23 }
 0x23f   : > { %v1548_v62 = vpop.eup %1547 }
 0x240   : > { %v406_v63 = vrot.slane %v1548_v62, %v2005_v37 }
 0x242   : > { %407 = vrot.lane.b32.xlu1 %v406_v63, %s1760_s7 }
 0x243   : > { %v1550_v2 = vpop.eup %1549 }
 0x244   : > { %v467_v3 = vrot.slane %v1550_v2, %v2005_v37  ;;  %v1552_v24 = vpop.eup %1551 }
 0x245   : > { %v435_v27 = vadd.f32 1.0, %v1552_v24 }
 0x246   : > { %468 = vrot.lane.b32.xlu0 %v467_v3, %s1762_s10 }
 0x247   : > { %1553 = vrcp.f32 %v435_v27 }
 0x24a   : > { %508 = vperm.xlu0 %1541, %v506_v4  }
 0x24e   : > { %511 = vrot.lane.b32.xlu0 %v1985_v26, %s1761_s15 }
 0x251   : > { %v1554_v32 = vpop.eup %1553 }
 0x2b4   : > { %v408_v5 = vpop.permute.xlu1 %407 }
 0x2b5   : > { %v410_v6 = vsub.f32 %v1985_v26, %v408_v5 }
 0x2b7   : > { %v418_v7 = vrot.slane %v410_v6, %v2005_v37 }
 0x2b8   : > { %v469_v11 = vpop.permute.xlu0 %468 }
 0x2b9   : > { %419 = vrot.lane.b32.xlu1 %v418_v7, %s1762_s10  ;;  %v471_v13 = vsub.f32 %v1985_v26, %v469_v11 }
 0x2bb   : > { %v479_v17 = vrot.slane %v471_v13, %v2005_v37 }
 0x2c9   : > { %v509_v29 = vpop.permute.xlu0 %508 }
 0x2ca   : > { %vm510_vm4 = vcmp.eq.s32.totalorder %v509_v29, 1 }
 0x2cd   : > { %v512_v38 = vpop.permute.xlu0 %511 }
 0x32b   : > { %v420_v12 = vpop.permute.xlu1 %419 }
 0x32c   : > { %v422_v14 = vmul.f32 %v1546_v49, %v420_v12 }
 0x32e   : > { %424 = vrot.lane.b32.xlu1 %v422_v14, %s1762_s10 }
 0x332   : > { %480 = vrot.lane.b32.xlu1 %v479_v17, %s1761_s15 }
 0x336   : > { %491 = vperm.xlu1 %1542, %v489_v18  }
 0x3a0   : > { %v425_v28 = vpop.permute.xlu1 %424 }
 0x3a1   : > { %v427_v30 = vadd.f32 %v1548_v62, %v425_v28 }
 0x3a3   : > { %v501_v31 = vrot.slane %v427_v30, %v2005_v37 }
 0x3a4   : > { %v481_v33 = vpop.permute.xlu1 %480 }
 0x3a5   : > { %v483_v34 = vmul.f32 %v1554_v32, %v481_v33  ;;  %502 = vrot.lane.b32.xlu0 %v501_v31, %s1760_s7 }
 0x3a7   : > { %v484_v39 = vadd.f32 %v1550_v2, %v483_v34  ;;  %v721_v2 = vstv %s532_s27 }
 0x3a8   : > { %vm723_vm8 = vcmp.ge.f32.partialorder %v721_v2, %v2033_v0  ;;  %vm722_vm9 = vcmp.lt.f32.partialorder %v721_v2, %v2028_v61 }
 0x3a9   : > { %v2054_v40 = vsel %vm510_vm4, %v484_v39, 0.0  ;;  %v514_v41 = vsel %vm510_vm4, %v484_v39, %v512_v38  ;;  %v741_v5 = vsel %vm723_vm8, 1, %v1763_v60  ;;  %v724_v17 = vsel %vm722_vm9, 1, %v1763_v60 }
 0x3aa   : > { %516 = vrot.lane.b32.xlu1 %v514_v41, %s1762_s10 }
 0x3b5   : > { %v2057_v42 = vpop.permute.xlu1 %491 }
 0x3b6   : > { %vm493_vm5 = vcmp.eq.s32.totalorder %v2057_v42, 1 }
 0x417   : > { %v2060_v43 = vpop.permute.xlu0 %502 }
 0x418   : > { %v505_v44 = vsel %vm493_vm5, %v2060_v43, %v1985_v26 }
 0x41c   : > { %v517_v45 = vpop.permute.xlu1 %516 }
 0x41d   : > { %v520_v46 = vsel %vm519_vm6, %v505_v44, %v517_v45 }
 0x41e   : > { %522 = vst.msk [vmem:[#allocation2] sm:$0x3] %vm521_vm7, %v520_v46 }
 0x425   : > { %v2068_v47 = vld [vmem:[#allocation2] sm:$0x3] }
 0x426   : > { %1376 = vmatmul.mubr.msk.f32.vlgmr.msra.gmra.mrb[0].mxu1 %vm299_vm1, %v2068_v47 }
 0x427   : > { %1452 = vmatpush1.bf16.msra.mxu1 %v1958_v9  ;;  %1071 = vmatprep.mubr.f32.mxu1 %v1758_v8 }
 0x428   : > { %1454 = vmatprep.subr.bf16.mxu1 %v1960_v10 }
 0x42b   : > { %1456 = vmatpush1.bf16.msra.mxu1 %v1963_v15  ;;  %v1375_v15 = vld [vmem:[%s1941_s12 + $0x4] sm:$0xf] }
 0x42c   : > { %1458 = vmatprep.subr.bf16.mxu1 %v1967_v16  ;;  %v665_v20 = vrot.slane %v1375_v15, 2 }
 0x42f   : > { %1460 = vmatpush1.bf16.msra.mxu1 %v1971_v21 }
 0x430   : > { %1462 = vmatprep.subr.bf16.mxu1 %v1975_v22 }
 0x433   : > { %1464 = vmatpush1.bf16.msra.mxu1 %v1979_v25 }
 0x4f9   : > { %v605_v26 = vpop.f32.mrb[0].mxu1 }
 0x4fa   : > { %v606_v48 = vadd.f32 %v605_v26, %v2001_v35  ;;  %v607_v49 = vpop.f32.mrb[1].mxu1 }
 0x4fb   : > { %v608_v8 = vadd.f32 %v607_v49, %v2003_v36 }
 0x4fc   : > { %v624_v9 = vrot.slane %v606_v48, %v2005_v37  ;;  %v610_v16 = vadd.f32 %v1375_v15, %v606_v48 }
 0x4fd   : > { %v681_v10 = vrot.slane %v608_v8, %v2005_v37  ;;  %v667_v23 = vadd.f32 %v665_v20, %v608_v8 }
 0x4fe   : > { %625 = vrot.lane.b32.xlu0 %v624_v9, %s1760_s7  ;;  %v1377_v21 = vmul.f32 -1.442695, %v610_v16 }
 0x4ff   : > { %v1378_v24 = vmul.f32 -1.442695, %v667_v23 }
 0x500   : > { %1555 = vpow2.f32 %v1377_v21 }
 0x502   : > { %682 = vrot.lane.b32.xlu0 %v681_v10, %s1760_s7 }
 0x50a   : > { %v1556_v22 = vpop.eup %1555 }
 0x50b   : > { %v614_v25 = vadd.f32 1.0, %v1556_v22  ;;  %v1380_v22 = vld [vmem:[%s1941_s12 + $0x8] sm:$0xf] }
 0x50d   : > { %1557 = vrcp.f32 %v614_v25 }
 0x517   : > { %v1558_v50 = vpop.eup %1557 }
 0x570   : > { %v626_v51 = vpop.permute.xlu0 %625 }
 0x571   : > { %v628_v52 = vmul.f32 %v1558_v50, %v626_v51 }
 0x573   : > { %630 = vrot.lane.b32.xlu1 %v628_v52, %s1760_s7 }
 0x574   : > { %v683_v53 = vpop.permute.xlu0 %682 }
 0x575   : > { %v685_v54 = vmul.f32 %v1558_v50, %v683_v53 }
 0x577   : > { %691 = vrot.lane.b32.xlu0 %v685_v54, %s1762_s10  ;;  %686 = vrot.lane.b32.xlu1 %v1375_v15, %s1761_s15 }
 0x5e5   : > { %v631_v55 = vpop.permute.xlu1 %630 }
 0x5e6   : > { %v633_v56 = vadd.f32 %v1375_v15, %v631_v55 }
 0x5e8   : > { %1559 = vtanh.f32 %v633_v56 }
 0x5e9   : > { %v687_v57 = vpop.permute.xlu1 %686  ;;  %v692_v59 = vpop.permute.xlu0 %691 }
 0x5ea   : > { %v688_v58 = vrot.slane %v687_v57, 2 }
 0x5ec   : > { %v694_v62 = vadd.f32 %v692_v59, %v688_v58 }
 0x5ee   : > { %1561 = vtanh.f32 %v694_v62 }
 0x5ef   : > { %1563 = vpow2.f32 %v1378_v24 }
 0x5f2   : > { %v1560_v63 = vpop.eup %1559 }
 0x5f3   : > { %v642_v1 = vrot.slane %v1560_v63, %v2005_v37 }
 0x5f5   : > { %643 = vrot.lane.b32.xlu1 %v642_v1, %s1760_s7 }
 0x5f8   : > { %v1562_v3 = vpop.eup %1561 }
 0x5f9   : > { %v703_v4 = vrot.slane %v1562_v3, %v2005_v37  ;;  %v1564_v27 = vpop.eup %1563 }
 0x5fa   : > { %v671_v28 = vadd.f32 1.0, %v1564_v27  ;;  %v899_v27 = vrot.slane %v1380_v22, 2 }
 0x5fb   : > { %704 = vrot.lane.b32.xlu0 %v703_v4, %s1762_s10 }
 0x5fc   : > { %1565 = vrcp.f32 %v671_v28 }
 0x5ff   : > { %743 = vperm.xlu0 %1541, %v741_v5   ;;  %v955_v5 = vstv %s766_s26 }
 0x600   : > { %vm957_vm12 = vcmp.ge.f32.partialorder %v955_v5, %v2033_v0  ;;  %vm956_vm13 = vcmp.lt.f32.partialorder %v955_v5, %v2028_v61 }
 0x601   : > { %v958_v20 = vsel %vm956_vm13, 1, %v1763_v60 }
 0x606   : > { %v1566_v31 = vpop.eup %1565 }
 0x667   : > { %v644_v6 = vpop.permute.xlu1 %643 }
 0x668   : > { %v646_v7 = vsub.f32 %v2068_v47, %v644_v6 }
 0x66a   : > { %v654_v11 = vrot.slane %v646_v7, %v2005_v37 }
 0x66c   : > { %655 = vrot.lane.b32.xlu1 %v654_v11, %s1762_s10  ;;  %v975_v11 = vsel %vm957_vm12, 1, %v1763_v60 }
 0x66d   : > { %v705_v12 = vpop.permute.xlu0 %704 }
 0x66e   : > { %v707_v13 = vsub.f32 %v2068_v47, %v705_v12 }
 0x670   : > { %v715_v14 = vrot.slane %v707_v13, %v2005_v37 }
 0x672   : > { %716 = vrot.lane.b32.xlu0 %v715_v14, %s1761_s15 }
 0x676   : > { %726 = vperm.xlu0 %1541, %v724_v17  }
 0x67e   : > { %v2108_v29 = vpop.permute.xlu0 %743 }
 0x67f   : > { %vm745_vm10 = vcmp.eq.s32.totalorder %v2108_v29, 1 }
 0x6de   : > { %v656_v18 = vpop.permute.xlu1 %655 }
 0x6df   : > { %v658_v19 = vmul.f32 %v1558_v50, %v656_v18 }
 0x6e1   : > { %660 = vrot.lane.b32.xlu1 %v658_v19, %s1762_s10 }
 0x6e4   : > { %v717_v30 = vpop.permute.xlu0 %716 }
 0x6e5   : > { %746 = vrot.lane.b32.xlu1 %v2068_v47, %s1761_s15  ;;  %v719_v32 = vmul.f32 %v1566_v31, %v717_v30 }
 0x6e7   : > { %v2110_v38 = vadd.f32 %v1562_v3, %v719_v32 }
 0x6f5   : > { %v2119_v45 = vpop.permute.xlu0 %726 }
 0x6f6   : > { %vm728_vm11 = vcmp.eq.s32.totalorder %v2119_v45, 1 }
 0x753   : > { %v661_v33 = vpop.permute.xlu1 %660 }
 0x754   : > { %v663_v34 = vadd.f32 %v1560_v63, %v661_v33 }
 0x756   : > { %v736_v39 = vrot.slane %v663_v34, %v2005_v37 }
 0x757   : > { %v747_v41 = vpop.permute.xlu1 %746 }
 0x758   : > { %737 = vrot.lane.b32.xlu1 %v736_v39, %s1760_s7  ;;  %v749_v44 = vsel %vm745_vm10, %v2110_v38, %v747_v41 }
 0x759   : > { %751 = vrot.lane.b32.xlu0 %v749_v44, %s1762_s10 }
 0x7ca   : > { %v2122_v46 = vpop.permute.xlu1 %737 }
 0x7cb   : > { %v740_v26 = vsel %vm728_vm11, %v2122_v46, %v2068_v47  ;;  %v752_v48 = vpop.permute.xlu0 %751 }
 0x7cc   : > { %v754_v49 = vsel %vm519_vm6, %v740_v26, %v752_v48 }
 0x7cd   : > { %755 = vst.msk [vmem:[#allocation2] sm:$0x3] %vm521_vm7, %v754_v49 }
 0x7d4   : > { %v2130_v9 = vld [vmem:[#allocation2] sm:$0x3] }
 0x7d5   : > { %1381 = vmatmul.mubr.msk.f32.vlgmr.msra.gmra.mrb[2].mxu0 %vm299_vm1, %v2130_v9 }
 0x8a8   : > { %v839_v8 = vpop.f32.mrb[2].mxu0 }
 0x8a9   : > { %v840_v10 = vadd.f32 %v839_v8, %v2001_v35  ;;  %v841_v15 = vpop.f32.mrb[3].mxu0 }
 0x8aa   : > { %v842_v21 = vadd.f32 %v841_v15, %v2003_v36 }
 0x8ab   : > { %v858_v16 = vrot.slane %v840_v10, %v2005_v37  ;;  %v844_v25 = vadd.f32 %v1380_v22, %v840_v10 }
 0x8ac   : > { %v915_v47 = vrot.slane %v842_v21, %v2005_v37  ;;  %v901_v28 = vadd.f32 %v899_v27, %v842_v21 }
 0x8ad   : > { %859 = vrot.lane.b32.xlu1 %v858_v16, %s1760_s7  ;;  %v1382_v50 = vmul.f32 -1.442695, %v844_v25 }
 0x8ae   : > { %v1383_v30 = vmul.f32 -1.442695, %v901_v28 }
 0x8af   : > { %1567 = vpow2.f32 %v1382_v50 }
 0x8b1   : > { %916 = vrot.lane.b32.xlu1 %v915_v47, %s1760_s7 }
 0x8b9   : > { %v1568_v51 = vpop.eup %1567 }
 0x8ba   : > { %v848_v52 = vadd.f32 1.0, %v1568_v51 }
 0x8bc   : > { %1569 = vrcp.f32 %v848_v52 }
 0x8c6   : > { %v1570_v53 = vpop.eup %1569 }
 0x91f   : > { %v860_v54 = vpop.permute.xlu1 %859 }
 0x920   : > { %v862_v55 = vmul.f32 %v1570_v53, %v860_v54 }
 0x922   : > { %864 = vrot.lane.b32.xlu0 %v862_v55, %s1760_s7  ;;  %v1385_v55 = vld [vmem:[%s1941_s12 + $0xc] sm:$0xf]  ;;  %s999_s12 = sadd.s32 3, %s2021_s29 }
 0x923   : > { %v917_v56 = vpop.permute.xlu1 %916  ;;  %s1000_s24 = scvt.s32.f32 %s999_s12 }
 0x924   : > { %v919_v57 = vmul.f32 %v1570_v53, %v917_v56 }
 0x926   : > { %925 = vrot.lane.b32.xlu1 %v919_v57, %s1762_s10  ;;  %920 = vrot.lane.b32.xlu0 %v1380_v22, %s1761_s15 }
 0x994   : > { %v865_v58 = vpop.permute.xlu0 %864 }
 0x995   : > { %v867_v59 = vadd.f32 %v1380_v22, %v865_v58 }
 0x997   : > { %1571 = vtanh.f32 %v867_v59 }
 0x998   : > { %v921_v62 = vpop.permute.xlu0 %920  ;;  %v926_v1 = vpop.permute.xlu1 %925 }
 0x999   : > { %v922_v63 = vrot.slane %v921_v62, 2 }
 0x99b   : > { %v928_v2 = vadd.f32 %v926_v1, %v922_v63 }
 0x99d   : > { %1573 = vtanh.f32 %v928_v2 }
 0x99e   : > { %1575 = vpow2.f32 %v1383_v30 }
 0x9a1   : > { %v1572_v3 = vpop.eup %1571 }
 0x9a2   : > { %v876_v4 = vrot.slane %v1572_v3, %v2005_v37 }
 0x9a4   : > { %877 = vrot.lane.b32.xlu0 %v876_v4, %s1760_s7 }
 0x9a7   : > { %v1574_v6 = vpop.eup %1573 }
 0x9a8   : > { %v937_v7 = vrot.slane %v1574_v6, %v2005_v37  ;;  %v1576_v31 = vpop.eup %1575 }
 0x9a9   : > { %v905_v32 = vadd.f32 1.0, %v1576_v31  ;;  %v1133_v31 = vrot.slane %v1385_v55, 2 }
 0x9aa   : > { %938 = vrot.lane.b32.xlu1 %v937_v7, %s1762_s10 }
 0x9ab   : > { %1577 = vrcp.f32 %v905_v32 }
 0x9ae   : > { %977 = vperm.xlu1 %1542, %v975_v11  }
 0x9b5   : > { %v1578_v39 = vpop.eup %1577 }
 0xa16   : > { %v878_v12 = vpop.permute.xlu0 %877 }
 0xa17   : > { %v880_v13 = vsub.f32 %v2130_v9, %v878_v12 }
 0xa19   : > { %v888_v14 = vrot.slane %v880_v13, %v2005_v37  ;;  %v1189_v13 = vstv %s1000_s24 }
 0xa1a   : > { %vm1191_vm0 = vcmp.ge.f32.partialorder %v1189_v13, %v2033_v0 }
 0xa1b   : > { %889 = vrot.lane.b32.xlu0 %v888_v14, %s1762_s10 }
 0xa1c   : > { %v939_v17 = vpop.permute.xlu1 %938 }
 0xa1d   : > { %v941_v18 = vsub.f32 %v2130_v9, %v939_v17 }
 0xa1f   : > { %v949_v19 = vrot.slane %v941_v18, %v2005_v37  ;;  %v1209_v18 = vsel %vm1191_vm0, 1, %v1763_v60 }
 0xa21   : > { %950 = vrot.lane.b32.xlu1 %v949_v19, %s1761_s15 }
 0xa25   : > { %960 = vperm.xlu1 %1542, %v958_v20  }
 0xa2d   : > { %v2162_v33 = vpop.permute.xlu1 %977 }
 0xa2e   : > { %vm979_vm14 = vcmp.eq.s32.totalorder %v2162_v33, 1 }
 0xa8d   : > { %v890_v23 = vpop.permute.xlu0 %889 }
 0xa8e   : > { %v892_v24 = vmul.f32 %v1570_v53, %v890_v23 }
 0xa90   : > { %894 = vrot.lane.b32.xlu0 %v892_v24, %s1762_s10 }
 0xa93   : > { %v951_v34 = vpop.permute.xlu1 %950 }
 0xa94   : > { %980 = vrot.lane.b32.xlu0 %v2130_v9, %s1761_s15  ;;  %v953_v41 = vmul.f32 %v1578_v39, %v951_v34 }
 0xa96   : > { %v2164_v48 = vadd.f32 %v1574_v6, %v953_v41 }
 0xa98   : > { %v991_v30 = vsel %vm979_vm14, %v2164_v48, 0.0 }
 0xaa4   : > { %v2173_v15 = vpop.permute.xlu1 %960 }
 0xaa5   : > { %vm962_vm15 = vcmp.eq.s32.totalorder %v2173_v15, 1 }
 0xb02   : > { %v895_v44 = vpop.permute.xlu0 %894 }
 0xb03   : > { %v897_v26 = vadd.f32 %v1572_v3, %v895_v44 }
 0xb05   : > { %v970_v49 = vrot.slane %v897_v26, %v2005_v37 }
 0xb06   : > { %v981_v8 = vpop.permute.xlu0 %980 }
 0xb07   : > { %971 = vrot.lane.b32.xlu0 %v970_v49, %s1760_s7  ;;  %v983_v10 = vsel %vm979_vm14, %v2164_v48, %v981_v8  ;;  %v757_v48 = vsel %vm745_vm10, %v2110_v38, 0.0 }
 0xb08   : > { %985 = vrot.lane.b32.xlu1 %v983_v10, %s1762_s10 }
 0xb79   : > { %v2176_v16 = vpop.permute.xlu0 %971 }
 0xb7a   : > { %v974_v21 = vsel %vm962_vm15, %v2176_v16, %v2130_v9  ;;  %v986_v47 = vpop.permute.xlu1 %985  ;;  %v990_v29 = vsel %vm962_vm15, %v2176_v16, 0.0 }
 0xb7b   : > { %v988_v22 = vsel %vm519_vm6, %v974_v21, %v986_v47  ;;  %v523_v21 = vsel %vm493_vm5, %v2060_v43, 0.0 }
 0xb7c   : > { %989 = vst.msk [vmem:[#allocation2] sm:$0x3] %vm521_vm7, %v988_v22 }
 0xb83   : > { %v2184_v25 = vld [vmem:[#allocation2] sm:$0x3] }
 0xb84   : > { %1386 = vmatmul.mubr.msk.f32.vlgmr.msra.gmra.mrb[2].mxu1 %vm299_vm1, %v2184_v25  ;;  %vm1190_vm1 = vcmp.lt.f32.partialorder %v1189_v13, %v2028_v61 }
 0xb85   : > { %v1192_v0 = vsel %vm1190_vm1, 1, %v1763_v60 }
 0xc57   : > { %v1073_v50 = vpop.f32.mrb[2].mxu1 }
 0xc58   : > { %v1074_v51 = vadd.f32 %v1073_v50, %v2001_v35  ;;  %v1075_v52 = vpop.f32.mrb[3].mxu1 }
 0xc59   : > { %v1076_v54 = vadd.f32 %v1075_v52, %v2003_v36 }
 0xc5a   : > { %v1092_v53 = vrot.slane %v1074_v51, %v2005_v37  ;;  %v1078_v56 = vadd.f32 %v1385_v55, %v1074_v51 }
 0xc5b   : > { %v1149_v9 = vrot.slane %v1076_v54, %v2005_v37  ;;  %v1135_v32 = vadd.f32 %v1133_v31, %v1076_v54 }
 0xc5c   : > { %1093 = vrot.lane.b32.xlu0 %v1092_v53, %s1760_s7  ;;  %v1387_v57 = vmul.f32 -1.442695, %v1078_v56  ;;  %v756_v53 = vsel %vm728_vm11, %v2122_v46, 0.0 }
 0xc5d   : > { %v1388_v34 = vmul.f32 -1.442695, %v1135_v32 }
 0xc5e   : > { %1579 = vpow2.f32 %v1387_v57 }
 0xc60   : > { %1150 = vrot.lane.b32.xlu0 %v1149_v9, %s1760_s7 }
 0xc68   : > { %v1580_v58 = vpop.eup %1579 }
 0xc69   : > { %v1082_v59 = vadd.f32 1.0, %v1580_v58 }
 0xc6b   : > { %1581 = vrcp.f32 %v1082_v59 }
 0xc75   : > { %v1582_v62 = vpop.eup %1581 }
 0xcce   : > { %v1094_v35 = vpop.permute.xlu0 %1093 }
 0xccf   : > { %v1096_v63 = vmul.f32 %v1582_v62, %v1094_v35 }
 0xcd1   : > { %1098 = vrot.lane.b32.xlu1 %v1096_v63, %s1760_s7 }
 0xcd2   : > { %v1151_v36 = vpop.permute.xlu0 %1150 }
 0xcd3   : > { %v1153_v1 = vmul.f32 %v1582_v62, %v1151_v36 }
 0xcd5   : > { %1159 = vrot.lane.b32.xlu0 %v1153_v1, %s1762_s10  ;;  %1154 = vrot.lane.b32.xlu1 %v1385_v55, %s1761_s15 }
 0xd43   : > { %v1099_v2 = vpop.permute.xlu1 %1098 }
 0xd44   : > { %v1101_v3 = vadd.f32 %v1385_v55, %v1099_v2 }
 0xd46   : > { %1583 = vtanh.f32 %v1101_v3 }
 0xd47   : > { %v1155_v4 = vpop.permute.xlu1 %1154  ;;  %v1160_v6 = vpop.permute.xlu0 %1159 }
 0xd48   : > { %v1156_v5 = vrot.slane %v1155_v4, 2 }
 0xd4a   : > { %v1162_v7 = vadd.f32 %v1160_v6, %v1156_v5 }
 0xd4c   : > { %1585 = vtanh.f32 %v1162_v7 }
 0xd4d   : > { %1587 = vpow2.f32 %v1388_v34 }
 0xd50   : > { %v1584_v11 = vpop.eup %1583 }
 0xd51   : > { %v1110_v12 = vrot.slane %v1584_v11, %v2005_v37 }
 0xd53   : > { %1111 = vrot.lane.b32.xlu1 %v1110_v12, %s1760_s7 }
 0xd56   : > { %v1586_v14 = vpop.eup %1585 }
 0xd57   : > { %v1171_v17 = vrot.slane %v1586_v14, %v2005_v37  ;;  %v1588_v39 = vpop.eup %1587 }
 0xd58   : > { %v1139_v61 = vadd.f32 1.0, %v1588_v39 }
 0xd59   : > { %1172 = vrot.lane.b32.xlu0 %v1171_v17, %s1762_s10 }
 0xd5a   : > { %1589 = vrcp.f32 %v1139_v61 }
 0xd5d   : > { %1211 = vperm.xlu0 %1541, %v1209_v18  }
 0xdc5   : > { %v1112_v19 = vpop.permute.xlu1 %1111 }
 0xdc6   : > { %v1114_v20 = vsub.f32 %v2184_v25, %v1112_v19 }
 0xdc8   : > { %v1122_v23 = vrot.slane %v1114_v20, %v2005_v37 }
 0xdca   : > { %1123 = vrot.lane.b32.xlu1 %v1122_v23, %s1762_s10 }
 0xdcb   : > { %v1173_v24 = vpop.permute.xlu0 %1172 }
 0xdcc   : > { %v1175_v27 = vsub.f32 %v2184_v25, %v1173_v24 }
 0xdce   : > { %v1183_v28 = vrot.slane %v1175_v27, %v2005_v37 }
 0xdd0   : > { %1184 = vrot.lane.b32.xlu0 %v1183_v28, %s1761_s15 }
 0xdd4   : > { %1194 = vperm.xlu0 %1541, %v1192_v0  }
 0xdd8   : > { %526 = vrot.lane.b32.xlu0 %v2054_v40, %s1762_s10  ;;  %v1590_v40 = vpop.eup %1589 }
 0xddc   : > { %993 = vrot.lane.b32.xlu0 %v991_v30, %s1762_s10  ;;  %v1212_v60 = vpop.permute.xlu0 %1211 }
 0xddd   : > { %vm1213_vm2 = vcmp.eq.s32.totalorder %v1212_v60, 1 }
 0xe3c   : > { %v1124_v41 = vpop.permute.xlu1 %1123 }
 0xe3d   : > { %v1126_v44 = vmul.f32 %v1582_v62, %v1124_v41 }
 0xe3f   : > { %1128 = vrot.lane.b32.xlu1 %v1126_v44, %s1762_s10 }
 0xe42   : > { %v1185_v26 = vpop.permute.xlu0 %1184 }
 0xe43   : > { %v1187_v49 = vmul.f32 %v1590_v40, %v1185_v26  ;;  %1214 = vrot.lane.b32.xlu1 %v2184_v25, %s1761_s15 }
 0xe45   : > { %v1188_v33 = vadd.f32 %v1586_v14, %v1187_v49 }
 0xe47   : > { %759 = vrot.lane.b32.xlu1 %v757_v48, %s1762_s10  ;;  %v1225_v8 = vsel %vm1213_vm2, %v1188_v33, 0.0 }
 0xe48   : > { %1227 = vrot.lane.b32.xlu0 %v1225_v8, %s1762_s10 }
 0xe53   : > { %v1195_v10 = vpop.permute.xlu0 %1194 }
 0xe54   : > { %vm1196_vm3 = vcmp.eq.s32.totalorder %v1195_v10, 1 }
 0xe57   : > { %v527_v47 = vpop.permute.xlu0 %526 }
 0xe58   : > { %v529_v22 = vsel %vm519_vm6, %v523_v21, %v527_v47 }
 0xe59   : > { %530 = vst.msk [vmem:[%s1952_s14] sm:$0x3] %vm521_vm7, %v529_v22 }
 0xe5b   : > { %v994_v38 = vpop.permute.xlu0 %993 }
 0xe5c   : > { %v996_v50 = vsel %vm519_vm6, %v990_v29, %v994_v38 }
 0xe5d   : > { %1384 = vst.msk [vmem:[%s1952_s14 + $0x4] sm:$0x3] %vm521_vm7, %v996_v50 }
 0xeb1   : > { %v1129_v51 = vpop.permute.xlu1 %1128 }
 0xeb2   : > { %v1131_v52 = vadd.f32 %v1584_v11, %v1129_v51 }
 0xeb4   : > { %v1204_v42 = vrot.slane %v1131_v52, %v2005_v37 }
 0xeb5   : > { %v1215_v43 = vpop.permute.xlu1 %1214 }
 0xeb6   : > { %1205 = vrot.lane.b32.xlu1 %v1204_v42, %s1760_s7  ;;  %v1217_v15 = vsel %vm1213_vm2, %v1188_v33, %v1215_v43 }
 0xeb9   : > { %v760_v54 = vpop.permute.xlu1 %759 }
 0xeba   : > { %v762_v16 = vsel %vm519_vm6, %v756_v53, %v760_v54  ;;  %1219 = vrot.lane.b32.xlu1 %v1217_v15, %s1762_s10  ;;  %v1228_v55 = vpop.permute.xlu0 %1227 }
 0xebb   : > { %1379 = vst.msk [vmem:[%s1952_s14 + $0x2] sm:$0x3] %vm521_vm7, %v762_v16 }
 0xf28   : > { %v1206_v9 = vpop.permute.xlu1 %1205  ;;  %1236 = sbr.rel (%p1390_p6) target bundleno = 3895 (0xf37), region = 52 }
 0xf29   : > { %v1224_v37 = vsel %vm1196_vm3, %v1206_v9, 0.0  ;;  %v1208_v45 = vsel %vm1196_vm3, %v1206_v9, %v2184_v25 }
 0xf2a   : > { %v1230_v56 = vsel %vm519_vm6, %v1224_v37, %v1228_v55 }
 0xf2b   : > { %1389 = vst.msk [vmem:[%s1952_s14 + $0x6] sm:$0x3] %vm521_vm7, %v1230_v56 }
 0xf2c   : > { %v1220_v46 = vpop.permute.xlu1 %1219 }
 0xf2d   : > { %v1222_v57 = vsel %vm519_vm6, %v1208_v45, %v1220_v46 }
 0xf2e   : > { %1223 = vst.msk [vmem:[#allocation2] sm:$0x3] %vm521_vm7, %v1222_v57 }
 0xf35   : > { %v1237_v58 = vld [vmem:[#allocation2] sm:$0x3] }
 0xf36   : > { %1238 = vst.msk [vmem:[#allocation9] sm:$0x3] %vm521_vm7, %v1237_v58 }
 0xf37 PF: > { %s1400_s6 = sshll.u32 %s1818_s22, 7  ;;  %s1253_s13 = sshll.u32 %s1952_s14, 4  ;;  %s2265_s13 = int_to_ptr.vmem [resolvable:$true] %s1253_s13 }
 0xf38   : > { %s2262_s29 = scalar_lea.hbm %s2337_s4, %s1400_s6  ;;  %s1240_s28 = scalar_lea.sflag [#allocation5], %s1937_s23 }
 0xf39   : > { %s1649_s16 = scalar_lea.vmem %s2265_s13, 128  ;;  %s1764_s17 = smov [#allocation8]  }
 0xf3a   : > { %p1650_p8 = scmp.ne.s32.totalorder %s2265_s13, %s1649_s16  ;;  %s1653_s27 = sshll.u32 %s1764_s17, 4  ;;  %s1654_s27 = int_to_ptr.vmem [resolvable:$false] %s1653_s27 }
 0xf3b   : > { %s1655_s11 = scalar_lea.vmem %s1654_s27, 256  ;;  %p1656_p3 = scmp.lt.s32.totalorder %s2265_s13, %s1654_s27 }
 0xf3c   : > { %p1651_p9 = pnand %p1650_p8, %p1889_p11  ;;  %p1657_p7 = scmp.lt.s32.totalorder %s1655_s11, %s1649_s16 }
 0xf3e   : > { %p1652_p13 = pneg %p1651_p9  ;;  %p1658_p10 = por %p1657_p7, %p1656_p3 }
 0xf40   : > { %p1659_p2 = pnand %p1658_p10, %p1652_p13 }
 0xf42   : > { %1662 = shalt.err (!%p1659_p2)
}
 0xf43   : > { %s1663_s14 = scalar_lea.hbm %s2262_s29, 128  ;;  %s1667_s24 = scalar_lea.hbm %s2337_s4, 256 }
 0xf44   : > { %p1664_p0 = scmp.ne.s32.totalorder %s2262_s29, %s1663_s14  ;;  %p1668_p1 = scmp.lt.u32.totalorder %s2262_s29, %s2337_s4 }
 0xf45   : > { %p1669_p4 = scmp.lt.u32.totalorder %s1667_s24, %s1663_s14  ;;  %p1671_p8 = scmp.lt.u32.totalorder %s1663_s14, %s2262_s29 }
 0xf46   : > { %p1665_p5 = pnand %p1664_p0, %p1889_p11 }
 0xf47   : > { %p1670_p6 = por %p1669_p4, %p1668_p1 }
 0xf48   : > { %p1666_p12 = pneg %p1665_p5 }
 0xf49   : > { %p1672_p9 = por %p1671_p8, %p1670_p6 }
 0xf4b   : > { %p1673_p13 = pnand %p1672_p9, %p1666_p12 }
 0xf4d   : > { %1676 = shalt.err (!%p1673_p13)
}
 0xf4e   : > { %s1765_s15 = smov 2   ;;  %s1766_s16 = smov [#allocation9]  }
 0xf4f   : > { %1471 = dma.vmem_to_hbm [thread:$0]  (%p1889_p11), %s2265_s13, 128, %s2262_s29, %s1240_s28, %s1762_s10, %s1762_s10, %s1765_s15  }
 0xf50   : > { %s1267_s17 = sshll.u32 %s1766_s16, 4  ;;  %p2354_p7 = scmp.eq.s32.totalorder %s1818_s22, 1  ;;  %s1268_s17 = int_to_ptr.vmem [resolvable:$true] %s1267_s17 }
 0xf51   : > { %s1677_s27 = scalar_lea.vmem %s1268_s17, 32  ;;  %p1684_p0 = scmp.lt.s32.totalorder %s1268_s17, %s1268_s17 }
 0xf52   : > { %p1678_p3 = scmp.ne.s32.totalorder %s1268_s17, %s1677_s27  ;;  %p1685_p5 = scmp.lt.s32.totalorder %s1677_s27, %s1677_s27 }
 0xf54   : > { %p1679_p10 = pnand %p1678_p3, %p2354_p7  ;;  %p1686_p12 = por %p1685_p5, %p1684_p0 }
 0xf56   : > { %p1680_p2 = pneg %p1679_p10 }
 0xf58   : > { %p1687_p1 = pnand %p1686_p12, %p1680_p2 }
 0xf5a   : > { %1690 = shalt.err (!%p1687_p1)
}
 0xf5b   : > { %s1691_s23 = scalar_lea.hbm %s2338_s5, 32  ;;  %p2355_p4 = pmov %p2354_p7 }
 0xf5c   : > { %p1692_p11 = scmp.ne.s32.totalorder %s2338_s5, %s1691_s23  ;;  %p1697_p9 = scmp.lt.u32.totalorder %s1691_s23, %s2338_s5 }
 0xf5e   : > { %p1693_p6 = pnand %p1692_p11, %p2355_p4 }
 0xf60   : > { %p1694_p8 = pneg %p1693_p6 }
 0xf62   : > { %p1699_p13 = pnand %p1697_p9, %p1694_p8 }
 0xf64   : > { %1702 = shalt.err (!%p1699_p13)
}
 0xf65   : > { %p2356_p3 = pmov %p2355_p4 }
 0xf67   : > { %1473 = dma.vmem_to_hbm [thread:$0]  (%p2356_p3), %s1268_s17, 32, %s2338_s5, [#allocation10]  }
 0xf68   : > { %p2357_p7 = pmov %p2356_p3 }
 0xf69   : > { %p2358_p10 = pmov %p2356_p3 }
 0xf6a   : > { %1728 = dma.done.wait (%p2357_p7), [#allocation10], 32  }
 0xf6b   : > { %1730 = vsyncadd (%p2358_p10), [#allocation10], 4294967264 }
 0xf6c PF: > { %s1283_s12 = sand.u32 1, %s1737_s18   ;;  %p2359_p2 = scmp.ne.s32.totalorder %s2343_s25, 0 }
 0xf6d   : > { %p2360_p0 = scmp.ge.s32.totalorder %s1749_s21, 2  ;;  %s1284_s24 = scalar_lea.sflag [#allocation5], %s1283_s12 }
 0xf6f   : > { %p1486_p5 = pnand %p2360_p0, %p2359_p2 }
 0xf71   : > { %1732 = dma.done.wait (!%p1486_p5), %s1284_s24, 128  }
 0xf72   : > { %1734 = vsyncadd (!%p1486_p5), %s1284_s24, 4294967168  ;;  %p21_p12 = scmp.ge.s32.totalorder %s1854_s30, 4   ;;  %s2361_s18 = smov %s1741_s19 }
 0xf73   : > { %s2362_s19 = smov %s1745_s20  ;;  %s2363_s20 = smov %s1885_s8 }
 0xf74   : > { %s2364_s21 = smov %s1854_s30  ;;  %23 = sbr.rel (!%p21_p12) target bundleno = 7 (0x7), region = 107 }
 0xf7b   :  { %1289 = vsyncpa [#allocation4], 1 }
 0xf7c   :  { %1291 = vsyncpa [#allocation4 + $0x1], 1 }
 0xf7d   :  { %1292 = vsyncpa [#allocation7], 1 }
 0xf7e   :  { %1293 = vsyncpa [#allocation5], 1 }
 0xf7f   :  { %1295 = vsyncpa [#allocation5 + $0x1], 1 }
 0xf80   :  { %1296 = vsyncpa [#allocation10], 1 }

</bundles_post_ra>
